<compile_context>
chip_gen: v7x
topology: tpu7x:2x2x1
jax: 0.10.0
libtpu: 0.0.40
codegen_flags: <defaults>
</compile_context>

<pallas_src>
import jax
import jax.numpy as jnp
from jax.scipy.linalg import block_diag
from jax.experimental import pallas as pl
from jax.experimental.pallas import tpu as pltpu


_BIG = 1e30  # finite min/max sentinel (bf16-representable)


# --------------------------------------------------------------------------------------
# in-kernel helpers
# --------------------------------------------------------------------------------------
def _layer_norm(h, g, b, eps=1e-5):
    mu = jnp.mean(h, axis=-1, keepdims=True)
    var = jnp.mean((h - mu) ** 2, axis=-1, keepdims=True)
    return (h - mu) * jax.lax.rsqrt(var + eps) * g + b


def _gelu_erf(x):
    # erf-form GELU (torch nn.GELU default), Abramowitz & Stegun 7.1.26 (|err| ~ 1.5e-7).
    a1, a2, a3, a4, a5 = 0.254829592, -0.284496736, 1.421413741, -1.453152027, 1.061405429
    p = 0.3275911
    u = x * 0.7071067811865476
    au = jnp.abs(u)
    t = 1.0 / (1.0 + p * au)
    poly = ((((a5 * t + a4) * t + a3) * t + a2) * t + a1) * t
    r = 1.0 - poly * jnp.exp(-au * au)
    erf = jnp.where(u >= 0, r, -r)
    return 0.5 * x * (1.0 + erf)


# --------------------------------------------------------------------------------------
# per-layer "prep" kernel: node-wise terms computed once (hoisted out of the row loop)
# --------------------------------------------------------------------------------------
def pna_prep_kernel(x_ref, ln1g_ref, ln1b_ref, wa_ref, ba_ref, wb_ref, wpx_ref, bpx_ref,
                    a_ref, b_ref, c_ref):
    f32 = jnp.float32
    hn = _layer_norm(x_ref[...], ln1g_ref[...], ln1b_ref[...])
    hn_bf = hn.astype(jnp.bfloat16)
    a_ref[...] = jnp.dot(hn_bf, wa_ref[...], preferred_element_type=f32) + ba_ref[...]
    b_ref[...] = jnp.dot(hn_bf, wb_ref[...], preferred_element_type=f32).astype(jnp.bfloat16)
    c_ref[...] = jnp.dot(hn_bf, wpx_ref[...], preferred_element_type=f32) + bpx_ref[...]


# --------------------------------------------------------------------------------------
# fused aggregation + finalize kernel: grid = (target row tiles, neighbour chunks)
# --------------------------------------------------------------------------------------
def pna_agg_kernel(adj_ref, b_ref, a_ref, c_ref, x_ref, scal_ref,
                   wid_ref, wamp_ref, watt_ref,
                   ln2g_ref, ln2b_ref, w1_ref, b1_ref, w2_ref, b2_ref,
                   out_ref,
                   s1_sc, s2_sc, min_sc, max_sc, bsrc_sc):
    f32 = jnp.float32
    bf16 = jnp.bfloat16
    j = pl.program_id(1)
    nj = pl.num_programs(1)
    tj = adj_ref.shape[1]

    # ---- init accumulators at the first neighbour chunk --------------------------------
    @pl.when(j == 0)
    def _():
        s1_sc[...] = jnp.zeros_like(s1_sc)
        s2_sc[...] = jnp.zeros_like(s2_sc)
        min_sc[...] = jnp.full(min_sc.shape, _BIG, min_sc.dtype)
        max_sc[...] = jnp.full(max_sc.shape, -_BIG, max_sc.dtype)

    # ---- accumulate this neighbour chunk ------------------------------------------------
    adj_bf = adj_ref[...]                                   # [TI, TJ] bf16, adj[i,j]=1 iff j->i
    b_bf = b_ref[...]                                       # [TJ, C ] bf16, B = LN(x) @ WB
    s1_sc[...] += jnp.dot(adj_bf, b_bf, preferred_element_type=f32)
    s2_sc[...] += jnp.dot(adj_bf, b_bf * b_bf, preferred_element_type=f32)

    # masked running min/max over the chunk.  No [TI, TJ, C] temp: per-source-row updates
    # with bf16 carries kept in vregs; the adjacency column is extracted with a lane iota
    # and source rows are read via 8-aligned dynamic sublane slices of an f32 staging ref.
    bsrc_sc[...] = b_bf.astype(f32)
    adj_f = adj_bf.astype(f32)
    lane_ids = jax.lax.broadcasted_iota(jnp.int32, (1, tj), 1)

    def _chunk(s, carry):
        rmin, rmax = carry
        off = pl.multiple_of(s * 8, 8)
        rows = bsrc_sc[pl.ds(off, 8), :]                    # [8, C] f32
        for r in range(8):                                  # static unroll inside the fori
            jj = off + r
            col = jnp.sum(jnp.where(lane_ids == jj, adj_f, 0.0), axis=1, keepdims=True)
            has = col > 0.5                                 # [TI, 1] does target i see source jj?
            brow = rows[r:r + 1, :].astype(bf16)            # [1, C]
            rmin = jnp.where(has, jnp.minimum(rmin, brow), rmin)
            rmax = jnp.where(has, jnp.maximum(rmax, brow), rmax)
        return rmin, rmax

    rmin, rmax = jax.lax.fori_loop(0, tj // 8, _chunk, (min_sc[...], max_sc[...]))
    min_sc[...] = rmin
    max_sc[...] = rmax

    # ---- finalize at the last neighbour chunk -------------------------------------------
    @pl.when(j == nj - 1)
    def _():
        scal = scal_ref[...]                                # [TI, 4] = [1/deg, has_nb, amp, att]
        inv_deg = scal[:, 0:1]
        has_nb = scal[:, 1:2]
        amp = scal[:, 2:3]
        att = scal[:, 3:4]

        A = a_ref[...]                                      # [TI, C] = LN(x) @ WA + bA
        mean_b = s1_sc[...] * inv_deg
        var_b = s2_sc[...] * inv_deg - mean_b * mean_b      # Var_j(A_i + B_j) = Var_j(B_j)
        std_agg = jnp.sqrt(jnp.maximum(var_b, 0.0) + 1e-5)
        mean_agg = (A + mean_b) * has_nb
        min_agg = (A + rmin.astype(f32)) * has_nb
        max_agg = (A + rmax.astype(f32)) * has_nb

        # post_nns (towers batched, degree scalers factored out), PNAConv.lin folded offline
        aggcat = jnp.concatenate([mean_agg, min_agg, max_agg, std_agg], axis=-1).astype(bf16)
        p_id = jnp.dot(aggcat, wid_ref[...], preferred_element_type=f32)
        p_amp = jnp.dot(aggcat, wamp_ref[...], preferred_element_type=f32)
        p_att = jnp.dot(aggcat, watt_ref[...], preferred_element_type=f32)

        conv = c_ref[...] + p_id + amp * p_amp + att * p_att    # c_ref = LN(x)@(WPX@lin) + b'
        h1 = conv + x_ref[...]                                   # residual 1

        # PreLayerNorm -> Linear -> GELU -> Linear -> residual 2
        hn2 = _layer_norm(h1, ln2g_ref[...], ln2b_ref[...])
        z = jnp.dot(hn2.astype(bf16), w1_ref[...], preferred_element_type=f32) + b1_ref[...]
        z = _gelu_erf(z)
        z = jnp.dot(z.astype(bf16), w2_ref[...], preferred_element_type=f32) + b2_ref[...]
        # TODO(synk): Dropout layers are eval-mode identities (not applied).
        out_ref[...] = (z + h1).astype(out_ref.dtype)


# --------------------------------------------------------------------------------------
# wrappers
# --------------------------------------------------------------------------------------
def _pna_prep(x, lp, tile_p):
    N, D = x.shape
    C = lp["wa"].shape[1]

    def _full(arr):
        nd = arr.ndim
        return pl.BlockSpec(arr.shape, lambda i, _nd=nd: (0,) * _nd)

    return pl.pallas_call(
        pna_prep_kernel,
        out_shape=(
            jax.ShapeDtypeStruct((N, C), jnp.float32),    # A
            jax.ShapeDtypeStruct((N, C), jnp.bfloat16),   # B
            jax.ShapeDtypeStruct((N, D), jnp.float32),    # C (post x-term, lin folded)
        ),
        grid=(N // tile_p,),
        in_specs=[
            pl.BlockSpec((tile_p, D), lambda i: (i, 0)),
            _full(lp["ln1_g"]), _full(lp["ln1_b"]),
            _full(lp["wa"]), _full(lp["ba"]), _full(lp["wb"]),
            _full(lp["wpx"]), _full(lp["bpx"]),
        ],
        out_specs=[
            pl.BlockSpec((tile_p, C), lambda i: (i, 0)),
            pl.BlockSpec((tile_p, C), lambda i: (i, 0)),
            pl.BlockSpec((tile_p, D), lambda i: (i, 0)),
        ],
        compiler_params=pltpu.CompilerParams(dimension_semantics=("parallel",)),
    )(x, lp["ln1_g"], lp["ln1_b"], lp["wa"], lp["ba"], lp["wb"], lp["wpx"], lp["bpx"])


def _pna_layer(x, adj, scal, A, B, Cc, lp, tile_i, tile_j):
    N, D = x.shape
    C = A.shape[1]
    dm = lp["w1"].shape[1]

    def _full(arr):
        nd = arr.ndim
        return pl.BlockSpec(arr.shape, lambda i, j, _nd=nd: (0,) * _nd)

    flops = int(4 * N * N * C + 6 * N * (4 * C) * D + 4 * N * D * dm)
    bytes_accessed = int(N * N * 2 + (N // tile_i) * N * C * 2 + N * (C + 3 * D) * 4)

    return pl.pallas_call(
        pna_agg_kernel,
        out_shape=jax.ShapeDtypeStruct((N, D), jnp.float32),
        grid=(N // tile_i, N // tile_j),
        in_specs=[
            pl.BlockSpec((tile_i, tile_j), lambda i, j: (i, j)),   # adj (bf16, streamed)
            pl.BlockSpec((tile_j, C), lambda i, j: (j, 0)),        # B   (streamed by chunk)
            pl.BlockSpec((tile_i, C), lambda i, j: (i, 0)),        # A
            pl.BlockSpec((tile_i, D), lambda i, j: (i, 0)),        # C (lin-folded x term)
            pl.BlockSpec((tile_i, D), lambda i, j: (i, 0)),        # x (residual tile)
            pl.BlockSpec((tile_i, 4), lambda i, j: (i, 0)),        # degree scalars
            _full(lp["wagg_id"]), _full(lp["wagg_amp"]), _full(lp["wagg_att"]),
            _full(lp["ln2_g"]), _full(lp["ln2_b"]),
            _full(lp["w1"]), _full(lp["b1"]), _full(lp["w2"]), _full(lp["b2"]),
        ],
        out_specs=pl.BlockSpec((tile_i, D), lambda i, j: (i, 0)),
        scratch_shapes=[
            pltpu.VMEM((tile_i, C), jnp.float32),    # S1
            pltpu.VMEM((tile_i, C), jnp.float32),    # S2
            pltpu.VMEM((tile_i, C), jnp.bfloat16),   # running min
            pltpu.VMEM((tile_i, C), jnp.bfloat16),   # running max
            pltpu.VMEM((tile_j, C), jnp.float32),    # f32 staging of the B chunk (row reads)
        ],
        compiler_params=pltpu.CompilerParams(
            dimension_semantics=("parallel", "arbitrary"),
            vmem_limit_bytes=48 * 1024 * 1024,
        ),
        cost_estimate=pl.CostEstimate(
            flops=flops, transcendentals=int(N * dm), bytes_accessed=bytes_accessed),
    )(adj, B, A, Cc, x, scal,
      lp["wagg_id"], lp["wagg_amp"], lp["wagg_att"],
      lp["ln2_g"], lp["ln2_b"], lp["w1"], lp["b1"], lp["w2"], lp["b2"])


def pna_transformer_encoder(x, adj_bf16, scal, packed_layers, *,
                            tile_i=64, tile_j=128, tile_p=128):
    """Runs `depth` encoder layers; per layer: a node-wise prep kernel + a fused
    row-tile x neighbour-chunk aggregation kernel."""
    N, D = x.shape
    assert N % tile_i == 0 and N % tile_j == 0 and N % tile_p == 0
    assert tile_i % 16 == 0 and tile_j % 128 == 0 and tile_p % 16 == 0
    out = x
    for lp in packed_layers:
        A, B, Cc = _pna_prep(out, lp, tile_p)
        out = _pna_layer(out, adj_bf16, scal, A, B, Cc, lp, tile_i, tile_j)
    # TODO(synk): fusing the depth loop into one kernel only pays if the bf16 adj stays
    # resident in VMEM (small N); otherwise the per-layer [N, D] round trip is negligible.
    return out


# --------------------------------------------------------------------------------------
# parameters: torch-style layout + packing into fused, lane-dense kernel slabs
# --------------------------------------------------------------------------------------
def init_layer_params(key, dim, towers, dim_mlp):
    """Random parameters in the torch module's layout (weights transposed to [in, out])."""
    assert dim % towers == 0
    f_out = dim // towers
    n_in_post = (1 + 4 * 3) * dim            # cat([x, 4 aggregators x 3 scalers]) per tower
    ks = jax.random.split(key, 2 * towers + 3)
    sc = 0.1
    pre_w = [sc * jax.random.normal(ks[t], (2 * dim, dim), jnp.float32) for t in range(towers)]
    pre_b = [jnp.zeros((dim,), jnp.float32) for _ in range(towers)]
    post_w = [sc * jax.random.normal(ks[towers + t], (n_in_post, f_out), jnp.float32)
              for t in range(towers)]
    post_b = [jnp.zeros((f_out,), jnp.float32) for _ in range(towers)]
    lin_w = sc * jax.random.normal(ks[2 * towers], (dim, dim), jnp.float32)
    w1 = sc * jax.random.normal(ks[2 * towers + 1], (dim, dim_mlp), jnp.float32)
    w2 = sc * jax.random.normal(ks[2 * towers + 2], (dim_mlp, dim), jnp.float32)
    # NOTE: PNAConv's edge_encoder is never exercised (forward() passes no edge_attr).
    return dict(
        pre_w=pre_w, pre_b=pre_b, post_w=post_w, post_b=post_b,
        lin_w=lin_w, lin_b=jnp.zeros((dim,), jnp.float32),
        ln1_g=jnp.ones((dim,), jnp.float32), ln1_b=jnp.zeros((dim,), jnp.float32),
        ln2_g=jnp.ones((dim,), jnp.float32), ln2_b=jnp.zeros((dim,), jnp.float32),
        w1=w1, b1=jnp.zeros((dim_mlp,), jnp.float32),
        w2=w2, b2=jnp.zeros((dim,), jnp.float32),
    )


def pack_layer_params(p, dim, towers):
    """Fuse per-tower PNAConv weights into lane-dense slabs and fold PNAConv.lin offline:
         pre_nns[t]  -> WA (x_i rows) / WB (x_j rows) stacked along output lanes, bias bA
         post_nns[t] -> WPX' = WPX@lin, block-diagonal WAGG_{id,amp,att}@lin, b' = bpost@lin + b_lin
    """
    n_agg = 4
    bf = jnp.bfloat16
    lin_w, lin_b = p["lin_w"], p["lin_b"]
    WA = jnp.concatenate([w[:dim, :] for w in p["pre_w"]], axis=1)      # [dim, T*dim]
    WB = jnp.concatenate([w[dim:, :] for w in p["pre_w"]], axis=1)      # [dim, T*dim]
    bA = jnp.concatenate(p["pre_b"])[None, :]                           # [1, T*dim]
    WPX = jnp.concatenate([w[:dim, :] for w in p["post_w"]], axis=1)    # [dim, dim]
    bpost = jnp.concatenate(p["post_b"])[None, :]                       # [1, dim]
    WPXf = WPX @ lin_w                                                  # lin folded (f32)
    bpostf = bpost @ lin_w + lin_b[None, :]
    WAGGf = []
    for s in range(3):                       # scalers: identity, amplification, attenuation
        per_agg = []
        for a in range(n_agg):               # aggregators: mean, min, max, std
            r0 = dim + (s * n_agg + a) * dim
            per_agg.append(block_diag(*[w[r0:r0 + dim, :] for w in p["post_w"]]))
        WAGGf.append(jnp.concatenate(per_agg, axis=0) @ lin_w)          # [4*T*dim, dim]
    return dict(
        ln1_g=p["ln1_g"][None, :], ln1_b=p["ln1_b"][None, :],
        wa=WA.astype(bf), ba=bA, wb=WB.astype(bf),
        wpx=WPXf.astype(bf), bpx=bpostf,
        wagg_id=WAGGf[0].astype(bf), wagg_amp=WAGGf[1].astype(bf), wagg_att=WAGGf[2].astype(bf),
        ln2_g=p["ln2_g"][None, :], ln2_b=p["ln2_b"][None, :],
        w1=p["w1"].astype(bf), b1=p["b1"][None, :],
        w2=p["w2"].astype(bf), b2=p["b2"][None, :],
    )


# --------------------------------------------------------------------------------------
if __name__ == "__main__":
    key = jax.random.PRNGKey(0)
    N, dim, towers, dim_mlp, depth = 256, 128, 4, 256, 2
    tile_i, tile_j, tile_p = 64, 128, 128

    kx, kp = jax.random.split(key)
    x = jax.random.normal(kx, (N, dim), jnp.float32)

    # bidirectional ring graph: edge_index[0] = source j, edge_index[1] = target i
    idx = jnp.arange(N)
    src = jnp.concatenate([idx, (idx + 1) % N])
    dst = jnp.concatenate([(idx + 1) % N, idx])
    adj_f = jnp.zeros((N, N), jnp.float32).at[dst, src].set(1.0)
    adj = adj_f.astype(jnp.bfloat16)          # 0/1 exact in bf16; halves the O(N^2) HBM stream

    # PNA degree statistics & per-node scalers, precomputed exactly once (adj is layer-invariant)
    deg = jnp.sum(adj_f, axis=1)                              # in-degree
    deg_c = jnp.maximum(deg, 1.0)                             # PNAConv clamps deg to >= 1
    avg_log = jnp.mean(jnp.log(deg + 1.0))                    # avg_deg['log'] of this graph
    log_deg = jnp.log(deg_c + 1.0)
    scal = jnp.stack(
        [1.0 / deg_c,                                         # exact 1/deg for mean/std
         (deg > 0).astype(jnp.float32),                       # isolated targets aggregate to 0
         log_deg / avg_log,                                   # amplification scaler
         avg_log / log_deg],                                  # attenuation scaler
        axis=1).astype(jnp.float32)                           # [N, 4]

    layers = [pack_layer_params(init_layer_params(k, dim, towers, dim_mlp), dim, towers)
              for k in jax.random.split(kp, depth)]

    out = pna_transformer_encoder(x, adj, scal, layers,
                                  tile_i=tile_i, tile_j=tile_j, tile_p=tile_p)
    out = jax.block_until_ready(out)
    assert out.shape == (N, dim) and bool(jnp.all(jnp.isfinite(out)))
    print("KERNEL_OK")
</pallas_src>

<mosaic_0001>
module attributes {stable_mosaic.version = 11 : i64} {
  func.func @pna_prep_kernel(%arg0: i32, %arg1: memref<128x128xf32, #tpu.memory_space<vmem>>, %arg2: memref<1x128xf32, #tpu.memory_space<vmem>>, %arg3: memref<1x128xf32, #tpu.memory_space<vmem>>, %arg4: memref<128x512xbf16, #tpu.memory_space<vmem>>, %arg5: memref<1x512xf32, #tpu.memory_space<vmem>>, %arg6: memref<128x512xbf16, #tpu.memory_space<vmem>>, %arg7: memref<128x128xbf16, #tpu.memory_space<vmem>>, %arg8: memref<1x128xf32, #tpu.memory_space<vmem>>, %arg9: memref<128x512xf32, #tpu.memory_space<vmem>>, %arg10: memref<128x512xbf16, #tpu.memory_space<vmem>>, %arg11: memref<128x128xf32, #tpu.memory_space<vmem>>) attributes {dimension_semantics = [#tpu.dimension_semantics<parallel>], iteration_bounds = array<i64: 2>, scalar_prefetch = 0 : i64, scratch_operands = 0 : i64, tpu.core_type = #tpu.core_type<tc>, window_params = [{transform_indices = @transform_0, window_bounds = array<i64: 128, 128>}, {pipeline_mode = #tpu.pipeline_mode<synchronous>, transform_indices = @transform_1, window_bounds = array<i64: 1, 128>}, {pipeline_mode = #tpu.pipeline_mode<synchronous>, transform_indices = @transform_2, window_bounds = array<i64: 1, 128>}, {pipeline_mode = #tpu.pipeline_mode<synchronous>, transform_indices = @transform_3, window_bounds = array<i64: 128, 512>}, {pipeline_mode = #tpu.pipeline_mode<synchronous>, transform_indices = @transform_4, window_bounds = array<i64: 1, 512>}, {pipeline_mode = #tpu.pipeline_mode<synchronous>, transform_indices = @transform_5, window_bounds = array<i64: 128, 512>}, {pipeline_mode = #tpu.pipeline_mode<synchronous>, transform_indices = @transform_6, window_bounds = array<i64: 128, 128>}, {pipeline_mode = #tpu.pipeline_mode<synchronous>, transform_indices = @transform_7, window_bounds = array<i64: 1, 128>}, {transform_indices = @transform_8, window_bounds = array<i64: 128, 512>}, {transform_indices = @transform_9, window_bounds = array<i64: 128, 512>}, {transform_indices = @transform_10, window_bounds = array<i64: 128, 128>}]} {
    %c0 = arith.constant 0 : index
    %c0_0 = arith.constant 0 : index
    %0 = vector.load %arg1[%c0, %c0_0] : memref<128x128xf32, #tpu.memory_space<vmem>>, vector<128x128xf32>
    %c0_1 = arith.constant 0 : index
    %c0_2 = arith.constant 0 : index
    %1 = vector.load %arg2[%c0_1, %c0_2] : memref<1x128xf32, #tpu.memory_space<vmem>>, vector<1x128xf32>
    %c0_3 = arith.constant 0 : index
    %c0_4 = arith.constant 0 : index
    %2 = vector.load %arg3[%c0_3, %c0_4] : memref<1x128xf32, #tpu.memory_space<vmem>>, vector<1x128xf32>
    %cst = arith.constant dense<0.000000e+00> : vector<128xf32>
    %3 = vector.multi_reduction <add>, %0, %cst [1] : vector<128x128xf32> to vector<128xf32>
    %4 = vector.shape_cast %3 : vector<128xf32> to vector<128x1xf32>
    %cst_5 = arith.constant 1.280000e+02 : f32
    %5 = vector.broadcast %cst_5 : f32 to vector<128x1xf32>
    %6 = arith.divf %4, %5 : vector<128x1xf32>
    %7 = vector.broadcast %6 : vector<128x1xf32> to vector<128x128xf32>
    %8 = arith.subf %0, %7 : vector<128x128xf32>
    %9 = arith.mulf %8, %8 : vector<128x128xf32>
    %cst_6 = arith.constant dense<0.000000e+00> : vector<128xf32>
    %10 = vector.multi_reduction <add>, %9, %cst_6 [1] : vector<128x128xf32> to vector<128xf32>
    %11 = vector.shape_cast %10 : vector<128xf32> to vector<128x1xf32>
    %cst_7 = arith.constant 1.280000e+02 : f32
    %12 = vector.broadcast %cst_7 : f32 to vector<128x1xf32>
    %13 = arith.divf %11, %12 : vector<128x1xf32>
    %14 = vector.broadcast %6 : vector<128x1xf32> to vector<128x128xf32>
    %15 = arith.subf %0, %14 : vector<128x128xf32>
    %cst_8 = arith.constant 9.99999974E-6 : f32
    %16 = vector.broadcast %cst_8 : f32 to vector<128x1xf32>
    %17 = arith.addf %13, %16 : vector<128x1xf32>
    %18 = math.rsqrt %17 : vector<128x1xf32>
    %19 = vector.broadcast %18 : vector<128x1xf32> to vector<128x128xf32>
    %20 = arith.mulf %15, %19 : vector<128x128xf32>
    %21 = vector.broadcast %1 : vector<1x128xf32> to vector<128x128xf32>
    %22 = arith.mulf %20, %21 : vector<128x128xf32>
    %23 = vector.broadcast %2 : vector<1x128xf32> to vector<128x128xf32>
    %24 = arith.addf %22, %23 : vector<128x128xf32>
    %25 = arith.truncf %24 : vector<128x128xf32> to vector<128x128xbf16>
    %c0_9 = arith.constant 0 : index
    %c0_10 = arith.constant 0 : index
    %26 = vector.load %arg4[%c0_9, %c0_10] : memref<128x512xbf16, #tpu.memory_space<vmem>>, vector<128x512xbf16>
    %cst_11 = arith.constant dense<0.000000e+00> : vector<128x512xf32>
    %27 = tpu.matmul %25, %26, %cst_11 {dimension_numbers = #tpu.dot_dimension_numbers<[1], [0], [0], [1], [0, 0, 1, 1], [], []>} : vector<128x128xbf16>, vector<128x512xbf16>, vector<128x512xf32> -> vector<128x512xf32>
    %c0_12 = arith.constant 0 : index
    %c0_13 = arith.constant 0 : index
    %28 = vector.load %arg5[%c0_12, %c0_13] : memref<1x512xf32, #tpu.memory_space<vmem>>, vector<1x512xf32>
    %29 = vector.broadcast %28 : vector<1x512xf32> to vector<128x512xf32>
    %30 = arith.addf %27, %29 : vector<128x512xf32>
    %c0_14 = arith.constant 0 : index
    %c0_15 = arith.constant 0 : index
    %31 = vector.load %arg9[%c0_14, %c0_15] : memref<128x512xf32, #tpu.memory_space<vmem>>, vector<128x512xf32>
    tpu.vector_store %arg9[%c0_14, %c0_15], %30 {strides = array<i32>} : memref<128x512xf32, #tpu.memory_space<vmem>>, vector<128x512xf32>,
    %c0_16 = arith.constant 0 : index
    %c0_17 = arith.constant 0 : index
    %32 = vector.load %arg6[%c0_16, %c0_17] : memref<128x512xbf16, #tpu.memory_space<vmem>>, vector<128x512xbf16>
    %cst_18 = arith.constant dense<0.000000e+00> : vector<128x512xf32>
    %33 = tpu.matmul %25, %32, %cst_18 {dimension_numbers = #tpu.dot_dimension_numbers<[1], [0], [0], [1], [0, 0, 1, 1], [], []>} : vector<128x128xbf16>, vector<128x512xbf16>, vector<128x512xf32> -> vector<128x512xf32>
    %34 = arith.truncf %33 : vector<128x512xf32> to vector<128x512xbf16>
    %c0_19 = arith.constant 0 : index
    %c0_20 = arith.constant 0 : index
    %35 = vector.load %arg10[%c0_19, %c0_20] : memref<128x512xbf16, #tpu.memory_space<vmem>>, vector<128x512xbf16>
    tpu.vector_store %arg10[%c0_19, %c0_20], %34 {strides = array<i32>} : memref<128x512xbf16, #tpu.memory_space<vmem>>, vector<128x512xbf16>,
    %c0_21 = arith.constant 0 : index
    %c0_22 = arith.constant 0 : index
    %36 = vector.load %arg7[%c0_21, %c0_22] : memref<128x128xbf16, #tpu.memory_space<vmem>>, vector<128x128xbf16>
    %cst_23 = arith.constant dense<0.000000e+00> : vector<128x128xf32>
    %37 = tpu.matmul %25, %36, %cst_23 {dimension_numbers = #tpu.dot_dimension_numbers<[1], [0], [0], [1], [0, 0, 1, 1], [], []>} : vector<128x128xbf16>, vector<128x128xbf16>, vector<128x128xf32> -> vector<128x128xf32>
    %c0_24 = arith.constant 0 : index
    %c0_25 = arith.constant 0 : index
    %38 = vector.load %arg8[%c0_24, %c0_25] : memref<1x128xf32, #tpu.memory_space<vmem>>, vector<1x128xf32>
    %39 = vector.broadcast %38 : vector<1x128xf32> to vector<128x128xf32>
    %40 = arith.addf %37, %39 : vector<128x128xf32>
    %c0_26 = arith.constant 0 : index
    %c0_27 = arith.constant 0 : index
    %41 = vector.load %arg11[%c0_26, %c0_27] : memref<128x128xf32, #tpu.memory_space<vmem>>, vector<128x128xf32>
    tpu.vector_store %arg11[%c0_26, %c0_27], %40 {strides = array<i32>} : memref<128x128xf32, #tpu.memory_space<vmem>>, vector<128x128xf32>,
    return
  }
  func.func @transform_0(%arg0: i32) -> (i32, i32) {
    %c0_i32 = arith.constant 0 : i32
    %c0_i32_0 = arith.constant 0 : i32
    return %arg0, %c0_i32 : i32, i32
  }
  func.func @transform_1(%arg0: i32) -> (i32, i32) {
    %c0_i32 = arith.constant 0 : i32
    %c0_i32_0 = arith.constant 0 : i32
    %c0_i32_1 = arith.constant 0 : i32
    return %c0_i32, %c0_i32_0 : i32, i32
  }
  func.func @transform_2(%arg0: i32) -> (i32, i32) {
    %c0_i32 = arith.constant 0 : i32
    %c0_i32_0 = arith.constant 0 : i32
    %c0_i32_1 = arith.constant 0 : i32
    return %c0_i32, %c0_i32_0 : i32, i32
  }
  func.func @transform_3(%arg0: i32) -> (i32, i32) {
    %c0_i32 = arith.constant 0 : i32
    %c0_i32_0 = arith.constant 0 : i32
    %c0_i32_1 = arith.constant 0 : i32
    return %c0_i32, %c0_i32_0 : i32, i32
  }
  func.func @transform_4(%arg0: i32) -> (i32, i32) {
    %c0_i32 = arith.constant 0 : i32
    %c0_i32_0 = arith.constant 0 : i32
    %c0_i32_1 = arith.constant 0 : i32
    return %c0_i32, %c0_i32_0 : i32, i32
  }
  func.func @transform_5(%arg0: i32) -> (i32, i32) {
    %c0_i32 = arith.constant 0 : i32
    %c0_i32_0 = arith.constant 0 : i32
    %c0_i32_1 = arith.constant 0 : i32
    return %c0_i32, %c0_i32_0 : i32, i32
  }
  func.func @transform_6(%arg0: i32) -> (i32, i32) {
    %c0_i32 = arith.constant 0 : i32
    %c0_i32_0 = arith.constant 0 : i32
    %c0_i32_1 = arith.constant 0 : i32
    return %c0_i32, %c0_i32_0 : i32, i32
  }
  func.func @transform_7(%arg0: i32) -> (i32, i32) {
    %c0_i32 = arith.constant 0 : i32
    %c0_i32_0 = arith.constant 0 : i32
    %c0_i32_1 = arith.constant 0 : i32
    return %c0_i32, %c0_i32_0 : i32, i32
  }
  func.func @transform_8(%arg0: i32) -> (i32, i32) {
    %c0_i32 = arith.constant 0 : i32
    %c0_i32_0 = arith.constant 0 : i32
    return %arg0, %c0_i32 : i32, i32
  }
  func.func @transform_9(%arg0: i32) -> (i32, i32) {
    %c0_i32 = arith.constant 0 : i32
    %c0_i32_0 = arith.constant 0 : i32
    return %arg0, %c0_i32 : i32, i32
  }
  func.func @transform_10(%arg0: i32) -> (i32, i32) {
    %c0_i32 = arith.constant 0 : i32
    %c0_i32_0 = arith.constant 0 : i32
    return %arg0, %c0_i32 : i32, i32
  }
}

</mosaic_0001>

<bundles_post_ra>
// kernel: tpu_custom_call.1
= control target key start
LH: loop header
LB: loop body
LE: loop exit
PB: predicated region body
PF: predicated region fallthrough
CT: control target
= control target key end

     0   :  { %s3862_s0 = inlined_call_operand.hbm [shape: f32[256,128], index: 0, kind: input, shape index: {}]   ;;  %s3863_s1 = inlined_call_operand.vmem [shape: f32[1,128], index: 1, kind: input, shape index: {}]   ;;  %s3864_s2 = inlined_call_operand.vmem [shape: f32[1,128], index: 2, kind: input, shape index: {}]   ;;  %s3865_s3 = inlined_call_operand.hbm [shape: bf16[128,512], index: 3, kind: input, shape index: {}]   ;;  %s3866_s4 = inlined_call_operand.vmem [shape: f32[1,512], index: 4, kind: input, shape index: {}]   ;;  %s3867_s5 = inlined_call_operand.hbm [shape: bf16[128,512], index: 5, kind: input, shape index: {}]   ;;  %s3868_s6 = inlined_call_operand.hbm [shape: bf16[128,128], index: 6, kind: input, shape index: {}]   ;;  %s3869_s7 = inlined_call_operand.vmem [shape: f32[1,128], index: 7, kind: input, shape index: {}]   ;;  %s3870_s8 = inlined_call_operand.hbm [shape: f32[256,512], index: 8, kind: output, shape index: {0}]   ;;  %s3871_s9 = inlined_call_operand.hbm [shape: bf16[256,512], index: 9, kind: output, shape index: {1}]   ;;  %s3872_s10 = inlined_call_operand.hbm [shape: f32[256,128], index: 10, kind: output, shape index: {2}]  }
   0x1   :  { %3880 = sst [smem:[#allocation21_spill]] %s3869_s7 }
   0x2   :  { %3881 = sst [smem:[#allocation22_spill]] %s3872_s10 }
   0x3   :  { %16 = vsyncpa [#allocation3], 0 }
   0x4   :  { %18 = vsyncpa [#allocation3 + $0x1], 0 }
   0x5   :  { %19 = vsyncpa [#allocation6], 0 }
   0x6   :  { %20 = vsyncpa [#allocation9], 0 }
   0x7   :  { %21 = vsyncpa [#allocation4], 0 }
   0x8   :  { %23 = vsyncpa [#allocation4 + $0x1], 0 }
   0x9   :  { %24 = vsyncpa [#allocation12], 0 }
   0xa   :  { %26 = vsyncpa [#allocation12 + $0x1], 0  ;;  %s3043_s13 = smov 0   ;;  %s3045_s14 = smov 0  }
   0xb   :  { %s3047_s15 = smov 0   ;;  %s3049_s16 = smov 0  }
   0xc LB: > { %3882 = sst [smem:[#allocation19_spill]] %s2954_s13  ;;  %s3064_s17 = sadd.s32 4294967295, %s2966_s16   ;;  %s2966_s16 = sphi %s3049_s16, %s3908_s16   ;;  %s2962_s15 = sphi %s3047_s15, %s3907_s15   ;;  %s2958_s14 = sphi %s3045_s14, %s3906_s14   ;;  %s2954_s13 = sphi %s3043_s13, %s3905_s13  }
   0xd   : > { %s3873_s18 = sadd.s32 4294967294, %s2966_s16   ;;  %p52_p0 = scmp.ne.s32.totalorder %s2958_s14, %s2954_s13 }
   0xe   : > { %p3874_p1 = scmp.eq.s32.totalorder %s3064_s17, 0  ;;  %p229_p3 = scmp.eq.s32.totalorder %s3873_s18, 1 }
   0xf   : > { %p2244_p5 = scmp.ge.s32.totalorder %s2966_s16, 1  ;;  %p288_p7 = scmp.lt.s32.totalorder %s2966_s16, 3 }
  0x10   : > { %p3075_p4 = por %p3874_p1, %p52_p0  ;;  %p3080_p6 = por %p229_p3, %p52_p0 }
  0x11   : > { %p3085_p8 = pnand %p2244_p5, %p288_p7  ;;  %s2968_s22 = smov [#allocation5]  }
  0x12   : > { %s3883_s19 = scalar_select %p3075_p4, 1, 0 }
  0x13   : > { %s3884_s20 = scalar_select %p3080_p6, 1, 0 }
  0x14   : > { %s3886_s21 = scalar_select %p3085_p8, 1, 0 }
  0x15   : > { %3885 = sst [smem:[#allocation20_spill]] %s3884_s20  ;;  %s306_s23 = sshll.u32 %s2968_s22, 4  ;;  %s3089_s23 = int_to_ptr.vmem [resolvable:$true] %s306_s23 }
  0x16   : > { %p2502_p9 = pneg %p3085_p8  ;;  %s2969_s25 = smov [#allocation7]  }
  0x17   : > { %s322_s26 = sshll.u32 %s2969_s25, 4  ;;  %s2970_s27 = smov [#allocation8]   ;;  %s3100_s26 = int_to_ptr.vmem [resolvable:$true] %s322_s26 }
  0x18   : > { %p3096_p11 = pnand %p2502_p9, %p3874_p1  ;;  %s3102_s28 = sshll.u32 %s2970_s27, 4  ;;  %s336_s28 = int_to_ptr.vmem [resolvable:$true] %s3102_s28 }
  0x19   : > { %s2718_s11 = scalar_lea.hbm %s3865_s3, 4096 }
  0x1a   : > { %p2719_p12 = scmp.ne.s32.totalorder %s3865_s3, %s2718_s11  ;;  %p3112_p13 = pneg %p3096_p11 }
  0x1b   : > { %p2725_p5 = scmp.lt.u32.totalorder %s2718_s11, %s3865_s3 }
  0x1c   : > { %p2721_p0 = pnand %p3112_p13, %p2719_p12 }
  0x1e   : > { %p2722_p3 = pneg %p2721_p0 }
  0x20   : > { %p2727_p7 = pnand %p2725_p5, %p2722_p3 }
  0x22   : > { %2730 = shalt.err (!%p2727_p7)
}
  0x23   : > { %s2731_s29 = scalar_lea.vmem %s3089_s23, 4096  ;;  %p2739_p2 = scmp.lt.s32.totalorder %s3089_s23, %s3089_s23 }
  0x24   : > { %p2732_p9 = scmp.ne.s32.totalorder %s3089_s23, %s2731_s29  ;;  %p2740_p6 = scmp.lt.s32.totalorder %s2731_s29, %s2731_s29 }
  0x26   : > { %p2734_p10 = pnand %p2732_p9, %p3112_p13  ;;  %p2741_p12 = por %p2740_p6, %p2739_p2 }
  0x28   : > { %p2735_p1 = pneg %p2734_p10 }
  0x2a   : > { %p2742_p0 = pnand %p2741_p12, %p2735_p1 }
  0x2c   : > { %2745 = shalt.err (!%p2742_p0)
}
  0x2d   : > { %s2971_s30 = smov 256   ;;  %s2972_s11 = smov 16  }
  0x2e   : > { %2505 = dma.hbm_to_vmem [thread:$0]  (!%p3096_p11), %s3865_s3, 4096, %s3089_s23, [#allocation6], %s2971_s30, %s2971_s30, %s2972_s11  }
  0x2f   : > { %s2746_s20 = scalar_lea.hbm %s3867_s5, 4096 }
  0x30   : > { %p2747_p2 = scmp.ne.s32.totalorder %s3867_s5, %s2746_s20  ;;  %p2753_p10 = scmp.lt.u32.totalorder %s2746_s20, %s3867_s5 }
  0x32   : > { %p2749_p1 = pnand %p2747_p2, %p3112_p13 }
  0x34   : > { %p2750_p6 = pneg %p2749_p1 }
  0x36   : > { %p2755_p3 = pnand %p2753_p10, %p2750_p6 }
  0x38   : > { %2758 = shalt.err (!%p2755_p3)
}
  0x39   : > { %s2759_s23 = scalar_lea.vmem %s3100_s26, 4096  ;;  %p2767_p12 = scmp.lt.s32.totalorder %s3100_s26, %s3100_s26 }
  0x3a   : > { %p2760_p5 = scmp.ne.s32.totalorder %s3100_s26, %s2759_s23  ;;  %p2768_p0 = scmp.lt.s32.totalorder %s2759_s23, %s2759_s23 }
  0x3c   : > { %p2762_p7 = pnand %p2760_p5, %p3112_p13  ;;  %p2769_p2 = por %p2768_p0, %p2767_p12 }
  0x3e   : > { %p2763_p9 = pneg %p2762_p7 }
  0x40   : > { %p2770_p1 = pnand %p2769_p2, %p2763_p9 }
  0x42   : > { %2773 = shalt.err (!%p2770_p1)
}
  0x43   : > { %2508 = dma.hbm_to_vmem [thread:$0]  (!%p3096_p11), %s3867_s5, 4096, %s3100_s26, [#allocation6], %s2971_s30, %s2971_s30, %s2972_s11  }
  0x44   : > { %s2774_s12 = scalar_lea.hbm %s3868_s6, 1024 }
  0x45   : > { %p2775_p6 = scmp.ne.s32.totalorder %s3868_s6, %s2774_s12  ;;  %p2781_p5 = scmp.lt.u32.totalorder %s2774_s12, %s3868_s6 }
  0x47   : > { %p2777_p10 = pnand %p2775_p6, %p3112_p13 }
  0x49   : > { %p2778_p3 = pneg %p2777_p10 }
  0x4b   : > { %p2783_p7 = pnand %p2781_p5, %p2778_p3 }
  0x4d   : > { %2786 = shalt.err (!%p2783_p7)
}
  0x4e   : > { %s2787_s23 = scalar_lea.vmem %s336_s28, 1024  ;;  %p2795_p2 = scmp.lt.s32.totalorder %s336_s28, %s336_s28 }
  0x4f   : > { %p2788_p9 = scmp.ne.s32.totalorder %s336_s28, %s2787_s23  ;;  %p2796_p1 = scmp.lt.s32.totalorder %s2787_s23, %s2787_s23 }
  0x51   : > { %p2790_p12 = pnand %p2788_p9, %p3112_p13  ;;  %p2797_p4 = por %p2796_p1, %p2795_p2 }
  0x53   : > { %p2791_p0 = pneg %p2790_p12 }
  0x55   : > { %p2798_p8 = pnand %p2797_p4, %p2791_p0 }
  0x57   : > { %2801 = shalt.err (!%p2798_p8)
}
  0x58   : > { %s2973_s26 = smov 64   ;;  %s2974_s18 = smov 4  }
  0x59   : > { %2511 = dma.hbm_to_vmem [thread:$0]  (!%p3096_p11), %s3868_s6, 1024, %s336_s28, [#allocation9], %s2973_s26, %s2973_s26, %s2974_s18  }
  0x5a   : > { %s3176_s7 = sadd.s32 1, %s2966_s16   ;;  %s39_s13 = sadd.s32 1, %s2962_s15 }
  0x5b   : > { %s36_s10 = ssub.s32 %s2966_s16, %s3176_s7  ;;  %p46_p8 = scmp.ne.s32.totalorder %s2962_s15, %s2958_s14 }
  0x5c   : > { %p37_p4 = scmp.eq.s32.totalorder %s36_s10, 0  ;;  %p47_p13 = scmp.eq.s32.totalorder %s2966_s16, 0 }
  0x5d   : > { %p2529_p6 = scmp.lt.s32.totalorder %s2966_s16, 2  ;;  %p3889_p3 = scmp.eq.s32.totalorder %s3064_s17, 1 }
  0x5e   : > { %s3186_s20 = scalar_select %p37_p4, %s2962_s15, %s39_s13  }
  0x5f   : > { %p48_p10 = por %p47_p13, %p46_p8  ;;  %p3190_p5 = por %p3889_p3, %p46_p8 }
  0x60   : > { %s352_s24 = sand.u32 1, %s2962_s15   ;;  %s2380_s22 = sshll.u32 %s2966_s16, 11 }
  0x61   : > { %s2249_s28 = sshll.u32 %s352_s24, 7  ;;  %s3199_s29 = scalar_lea.hbm %s3862_s0, %s2380_s22 }
  0x62   : > { %s356_s23 = scalar_lea.vmem [#allocation2], %s2249_s28  ;;  %p3201_p11 = pnand %p2529_p6, %p48_p10 }
  0x63   : > { %s363_s26 = sshll.u32 %s356_s23, 4  ;;  %s3207_s30 = scalar_lea.sflag [#allocation3], %s352_s24  ;;  %s3205_s26 = int_to_ptr.vmem [resolvable:$true] %s363_s26 }
  0x64   : > { %s2802_s11 = scalar_lea.hbm %s3199_s29, 2048  ;;  %p2804_p9 = pneg %p3201_p11 }
  0x65   : > { %p2803_p7 = scmp.ne.s32.totalorder %s3199_s29, %s2802_s11  ;;  %s2807_s22 = scalar_lea.hbm %s3862_s0, 4096 }
  0x66   : > { %p2808_p2 = scmp.lt.u32.totalorder %s3199_s29, %s3862_s0  ;;  %p2809_p1 = scmp.lt.u32.totalorder %s2807_s22, %s2802_s11 }
  0x67   : > { %p2805_p12 = pnand %p2804_p9, %p2803_p7  ;;  %p2811_p8 = scmp.lt.u32.totalorder %s2802_s11, %s3199_s29 }
  0x68   : > { %p2810_p4 = por %p2809_p1, %p2808_p2 }
  0x69   : > { %p2806_p0 = pneg %p2805_p12 }
  0x6a   : > { %p2812_p13 = por %p2811_p8, %p2810_p4 }
  0x6c   : > { %p2813_p6 = pnand %p2812_p13, %p2806_p0 }
  0x6e   : > { %2816 = shalt.err (!%p2813_p6)
}
  0x6f   : > { %s2817_s24 = scalar_lea.vmem %s3205_s26, 2048  ;;  %s2975_s27 = smov [#allocation2]  }
  0x70   : > { %p2818_p10 = scmp.ne.s32.totalorder %s3205_s26, %s2817_s24  ;;  %s2822_s23 = sshll.u32 %s2975_s27, 4  ;;  %s2823_s23 = int_to_ptr.vmem [resolvable:$false] %s2822_s23 }
  0x71   : > { %s2824_s10 = scalar_lea.vmem %s2823_s23, 4096  ;;  %p2825_p12 = scmp.lt.s32.totalorder %s3205_s26, %s2823_s23 }
  0x72   : > { %p2820_p3 = pnand %p2818_p10, %p2804_p9  ;;  %p2826_p2 = scmp.lt.s32.totalorder %s2824_s10, %s2817_s24 }
  0x74   : > { %p2821_p7 = pneg %p2820_p3  ;;  %p2827_p1 = por %p2826_p2, %p2825_p12 }
  0x76   : > { %p2828_p4 = pnand %p2827_p1, %p2821_p7 }
  0x78   : > { %2831 = shalt.err (!%p2828_p4)
}
  0x79   : > { %s2976_s11 = smov 128   ;;  %s2977_s13 = smov 8  }
  0x7a   : > { %2515 = dma.hbm_to_vmem [thread:$0]  (!%p3201_p11), %s3199_s29, 2048, %s3205_s26, %s3207_s30, %s2976_s11, %s2976_s11, %s2977_s13  }
  0x7b   : > { %p3892_p9 = scmp.ne.s32.totalorder %s3886_s21, 0 }
  0x7c   : > { %s3238_s22 = sand.u32 (!%p3892_p9), 1, %s2958_s14   ;;  %p3893_p0 = scmp.ne.s32.totalorder (!%p3892_p9), %s3883_s19, 0 }
  0x7d   : > { %375 = sbr.rel (%p3892_p9) target bundleno = 836 (0x344), region = 52  ;;  %s2253_s28 = sshll.u32 (!%p3892_p9), %s3238_s22, 7 }
  0x7e   : > { %s378_s25 = scalar_lea.sflag (!%p3892_p9), [#allocation3], %s3238_s22  ;;  %s3244_s24 = scalar_lea.vmem (!%p3892_p9), [#allocation2], %s2253_s28 }
  0x84   : > { %2933 = dma.done.wait (%p3893_p0), %s378_s25, 2048  }
  0x85   : > { %2935 = vsyncadd (%p3893_p0), %s378_s25, 4294965248  ;;  %p3894_p11 = scmp.eq.s32.totalorder %s3064_s17, 0 }
  0x87   : > { %2937 = dma.done.wait (%p3894_p11), [#allocation6], 8192   ;;  %p3895_p8 = pmov %p3894_p11 }
  0x89   : > { %2939 = vsyncadd (%p3895_p8), [#allocation6], 4294959104  ;;  %p3896_p13 = pmov %p3895_p8 }
  0x8a   : > { %p3897_p6 = pmov %p3895_p8 }
  0x8b   : > { %2941 = dma.done.wait (%p3896_p13), [#allocation9], 1024  }
  0x8c   : > { %2943 = vsyncadd (%p3897_p6), [#allocation9], 4294966272  ;;  %v445_v0 = vld [vmem:[%s3244_s24] sm:$0xff]  ;;  %v447_v1 = vld [vmem:[%s3244_s24 + $0x10] sm:$0xff]  ;;  %s2257_s27 = sshll.u32 %s3238_s22, 9  ;;  %s2414_s10 = sshll.u32 %s3064_s17, 13 }
  0x8d   : > { %463 = vadd.xlane.f32.xlu0 %v445_v0  ;;  %467 = vadd.xlane.f32.xlu1 %v447_v1  ;;  %v446_v2 = vld [vmem:[%s3244_s24 + $0x8] sm:$0xff]  ;;  %v448_v3 = vld [vmem:[%s3244_s24 + $0x18] sm:$0xff]  ;;  %v449_v4 = vld [vmem:[%s3244_s24 + $0x20] sm:$0xff]  ;;  %s3540_s23 = scalar_lea.vmem [#allocation10], %s2257_s27  ;;  %s2258_s19 = sshll.u32 %s3238_s22, 8 }
  0x8e   : > { %v450_v5 = vld [vmem:[%s3244_s24 + $0x28] sm:$0xff]  ;;  %v3265_v6 = vld [vmem:[%s3244_s24 + $0x30] sm:$0xff]  ;;  %v3268_v7 = vld [vmem:[%s3244_s24 + $0x38] sm:$0xff]  ;;  %s2047_s11 = sshll.u32 %s3540_s23, 4  ;;  %s2023_s21 = scalar_lea.sflag [#allocation4], %s3238_s22  ;;  %s3665_s11 = int_to_ptr.vmem [resolvable:$true] %s2047_s11 }
  0x8f   : > { %v3271_v8 = vld [vmem:[%s3244_s24 + $0x40] sm:$0xff]  ;;  %v3274_v9 = vld [vmem:[%s3244_s24 + $0x48] sm:$0xff]  ;;  %v3279_v10 = vld [vmem:[%s3244_s24 + $0x50] sm:$0xff]  ;;  %s2832_s29 = scalar_lea.vmem %s3665_s11, 8192  ;;  %s2979_s26 = smov [#allocation10]  }
  0x90   : > { %v3282_v11 = vld [vmem:[%s3244_s24 + $0x58] sm:$0xff]  ;;  %v3287_v12 = vld [vmem:[%s3244_s24 + $0x60] sm:$0xff]  ;;  %v3290_v13 = vld [vmem:[%s3244_s24 + $0x68] sm:$0xff]  ;;  %p2833_p10 = scmp.ne.s32.totalorder %s3665_s11, %s2832_s29  ;;  %s2836_s18 = sshll.u32 %s2979_s26, 4  ;;  %s2837_s18 = int_to_ptr.vmem [resolvable:$false] %s2836_s18 }
  0x91   : > { %465 = vadd.xlane.f32.xlu0 %v446_v2  ;;  %469 = vadd.xlane.f32.xlu1 %v448_v3  ;;  %v3295_v14 = vld [vmem:[%s3244_s24 + $0x70] sm:$0xff]  ;;  %v3298_v15 = vld [vmem:[%s3244_s24 + $0x78] sm:$0xff]  ;;  %s3663_s24 = scalar_lea.hbm %s3870_s8, %s2414_s10  ;;  %s2838_s30 = scalar_lea.vmem %s2837_s18, 16384 }
  0x92   : > { %v2582_v16 = vld [vmem:[#allocation5 + $0x4] ss:$16 sps:$4 sm:$0xff]   ;;  %v2584_v17 = vld [vmem:[#allocation5 + $0xc] ss:$16 sps:$4 sm:$0xff]   ;;  %v2586_v18 = vld [vmem:[#allocation5] ss:$16 sps:$4 sm:$0xff]   ;;  %p2834_p3 = pnand %p2833_p10, %p3190_p5  ;;  %p2839_p12 = scmp.lt.s32.totalorder %s3665_s11, %s2837_s18 }
  0x93   : > { %v2587_v19 = vld [vmem:[#allocation5 + $0x8] ss:$16 sps:$4 sm:$0xff]   ;;  %v2588_v20 = vld [vmem:[#allocation5 + $0x24] ss:$16 sps:$4 sm:$0xff]   ;;  %v2590_v21 = vld [vmem:[#allocation5 + $0x2c] ss:$16 sps:$4 sm:$0xff]   ;;  %906 = vmatprep.subr.bf16.mxu0 %v2582_v16  ;;  %1019 = vmatprep.subr.bf16.mxu1 %v2584_v17  ;;  %p2840_p2 = scmp.lt.s32.totalorder %s2838_s30, %s2832_s29 }
  0x94   : > { %907 = vmatpush1.bf16.msra.mxu0 %v2586_v18  ;;  %1020 = vmatpush1.bf16.msra.mxu1 %v2587_v19  ;;  %v2592_v22 = vld [vmem:[#allocation5 + $0x20] ss:$16 sps:$4 sm:$0xff]   ;;  %v2593_v23 = vld [vmem:[#allocation5 + $0x28] ss:$16 sps:$4 sm:$0xff]   ;;  %p2835_p7 = pneg %p2834_p3 }
  0x95   : > { %471 = vadd.xlane.f32.xlu0 %v449_v4  ;;  %473 = vadd.xlane.f32.xlu1 %v450_v5  ;;  %p2841_p1 = por %p2840_p2, %p2839_p12 }
  0x96   : > { %908 = vmatprep.subr.bf16.mxu0 %v2588_v20  ;;  %1021 = vmatprep.subr.bf16.mxu1 %v2590_v21 }
  0x97   : > { %p2842_p4 = pnand %p2841_p1, %p2835_p7 }
  0x98   : > { %909 = vmatpush1.bf16.msra.mxu0 %v2592_v22  ;;  %1022 = vmatpush1.bf16.msra.mxu1 %v2593_v23  ;;  %v2600_v22 = vld [vmem:[#allocation5 + $0x64] ss:$16 sps:$4 sm:$0xff]   ;;  %v2602_v23 = vld [vmem:[#allocation5 + $0x6c] ss:$16 sps:$4 sm:$0xff]  }
  0x99   : > { %475 = vadd.xlane.f32.xlu0 %v3265_v6  ;;  %477 = vadd.xlane.f32.xlu1 %v3268_v7 }
  0x9d   : > { %479 = vadd.xlane.f32.xlu0 %v3271_v8  ;;  %481 = vadd.xlane.f32.xlu1 %v3274_v9 }
  0xa1   : > { %483 = vadd.xlane.f32.xlu0 %v3279_v10  ;;  %485 = vadd.xlane.f32.xlu1 %v3282_v11 }
  0xa5   : > { %487 = vadd.xlane.f32.xlu0 %v3287_v12  ;;  %489 = vadd.xlane.f32.xlu1 %v3290_v13 }
  0xa9   : > { %491 = vadd.xlane.f32.xlu0 %v3295_v14  ;;  %493 = vadd.xlane.f32.xlu1 %v3298_v15 }
 0x11a   : > { %v464_v24 = vpop.xlane.xlu0 %463  ;;  %v468_v25 = vpop.xlane.xlu1 %467 }
 0x11b   : > { %v496_v26 = vmul.f32 0.0078125, %v464_v24  ;;  %v498_v27 = vmul.f32 0.0078125, %v468_v25 }
 0x11d   : > { %v3304_v28 = vsub.f32 %v445_v0, %v496_v26  ;;  %v3306_v29 = vsub.f32 %v447_v1, %v498_v27  ;;  %v2604_v26 = vld [vmem:[#allocation5 + $0x60] ss:$16 sps:$4 sm:$0xff]   ;;  %v2605_v27 = vld [vmem:[#allocation5 + $0x68] ss:$16 sps:$4 sm:$0xff]  }
 0x11e   : > { %v466_v30 = vpop.xlane.xlu0 %465  ;;  %v470_v31 = vpop.xlane.xlu1 %469 }
 0x11f   : > { %v497_v32 = vmul.f32 0.0078125, %v466_v30  ;;  %v528_v33 = vmul.f32 %v3304_v28, %v3304_v28  ;;  %v499_v34 = vmul.f32 0.0078125, %v470_v31  ;;  %v530_v37 = vmul.f32 %v3306_v29, %v3306_v29 }
 0x121   : > { %v3310_v35 = vsub.f32 %v446_v2, %v497_v32  ;;  %544 = vadd.xlane.f32.xlu0 %v528_v33  ;;  %v3312_v36 = vsub.f32 %v448_v3, %v499_v34  ;;  %v2594_v3 = vld [vmem:[#allocation5 + $0x44] ss:$16 sps:$4 sm:$0xff]  }
 0x122   : > { %v472_v38 = vpop.xlane.xlu0 %471  ;;  %v474_v39 = vpop.xlane.xlu1 %473  ;;  %910 = vmatprep.subr.bf16.mxu0 %v2594_v3  ;;  %v2606_v34 = vld [vmem:[#allocation5 + $0x84] ss:$16 sps:$4 sm:$0xff]  }
 0x123   : > { %v500_v40 = vmul.f32 0.0078125, %v472_v38  ;;  %v529_v41 = vmul.f32 %v3310_v35, %v3310_v35  ;;  %v501_v42 = vmul.f32 0.0078125, %v474_v39  ;;  %v531_v45 = vmul.f32 %v3312_v36, %v3312_v36  ;;  %v2610_v38 = vld [vmem:[#allocation5 + $0x80] ss:$16 sps:$4 sm:$0xff]   ;;  %v2611_v39 = vld [vmem:[#allocation5 + $0x88] ss:$16 sps:$4 sm:$0xff]  }
 0x125   : > { %v3318_v43 = vsub.f32 %v449_v4, %v500_v40  ;;  %548 = vadd.xlane.f32.xlu0 %v530_v37  ;;  %546 = vadd.xlane.f32.xlu1 %v529_v41  ;;  %v3320_v44 = vsub.f32 %v450_v5, %v501_v42  ;;  %v2596_v4 = vld [vmem:[#allocation5 + $0x4c] ss:$16 sps:$4 sm:$0xff]   ;;  %v2616_v42 = vld [vmem:[#allocation5 + $0xa0] ss:$16 sps:$4 sm:$0xff]  }
 0x126   : > { %v476_v46 = vpop.xlane.xlu0 %475  ;;  %v478_v47 = vpop.xlane.xlu1 %477  ;;  %1023 = vmatprep.subr.bf16.mxu1 %v2596_v4  ;;  %v2608_v37 = vld [vmem:[#allocation5 + $0x8c] ss:$16 sps:$4 sm:$0xff]  }
 0x127   : > { %v502_v48 = vmul.f32 0.0078125, %v476_v46  ;;  %v532_v49 = vmul.f32 %v3318_v43, %v3318_v43  ;;  %v503_v50 = vmul.f32 0.0078125, %v478_v47  ;;  %v533_v53 = vmul.f32 %v3320_v44, %v3320_v44  ;;  %v2614_v41 = vld [vmem:[#allocation5 + $0xac] ss:$16 sps:$4 sm:$0xff]   ;;  %v2618_v46 = vld [vmem:[#allocation5 + $0xc4] ss:$16 sps:$4 sm:$0xff]  }
 0x128   : > { %v2620_v47 = vld [vmem:[#allocation5 + $0xcc] ss:$16 sps:$4 sm:$0xff]  }
 0x129   : > { %v3327_v51 = vsub.f32 %v3265_v6, %v502_v48  ;;  %550 = vadd.xlane.f32.xlu1 %v531_v45  ;;  %552 = vadd.xlane.f32.xlu0 %v532_v49  ;;  %v3330_v52 = vsub.f32 %v3268_v7, %v503_v50  ;;  %v2617_v45 = vld [vmem:[#allocation5 + $0xa8] ss:$16 sps:$4 sm:$0xff]   ;;  %v2622_v48 = vld [vmem:[#allocation5 + $0xc0] ss:$16 sps:$4 sm:$0xff]   ;;  %v2624_v50 = vld [vmem:[#allocation5 + $0xe4] ss:$16 sps:$4 sm:$0xff]  }
 0x12a   : > { %v480_v54 = vpop.xlane.xlu0 %479  ;;  %v482_v55 = vpop.xlane.xlu1 %481  ;;  %v2623_v49 = vld [vmem:[#allocation5 + $0xc8] ss:$16 sps:$4 sm:$0xff]  }
 0x12b   : > { %v504_v56 = vmul.f32 0.0078125, %v480_v54  ;;  %v534_v57 = vmul.f32 %v3327_v51, %v3327_v51  ;;  %v505_v58 = vmul.f32 0.0078125, %v482_v55  ;;  %v535_v61 = vmul.f32 %v3330_v52, %v3330_v52  ;;  %v2628_v54 = vld [vmem:[#allocation5 + $0xe0] ss:$16 sps:$4 sm:$0xff]   ;;  %v2629_v55 = vld [vmem:[#allocation5 + $0xe8] ss:$16 sps:$4 sm:$0xff]  }
 0x12d   : > { %v3337_v59 = vsub.f32 %v3271_v8, %v504_v56  ;;  %554 = vadd.xlane.f32.xlu1 %v533_v53  ;;  %556 = vadd.xlane.f32.xlu0 %v534_v57  ;;  %v3340_v60 = vsub.f32 %v3274_v9, %v505_v58  ;;  %v2598_v8 = vld [vmem:[#allocation5 + $0x40] ss:$16 sps:$4 sm:$0xff]   ;;  %v2599_v9 = vld [vmem:[#allocation5 + $0x48] ss:$16 sps:$4 sm:$0xff]   ;;  %v2626_v53 = vld [vmem:[#allocation5 + $0xec] ss:$16 sps:$4 sm:$0xff]  }
 0x12e   : > { %v484_v62 = vpop.xlane.xlu0 %483  ;;  %v486_v63 = vpop.xlane.xlu1 %485  ;;  %911 = vmatpush1.bf16.msra.mxu0 %v2598_v8  ;;  %1024 = vmatpush1.bf16.msra.mxu1 %v2599_v9  ;;  %v2978_v56 = vmov 0   ;;  %v2632_v57 = vld [vmem:[#allocation7 + $0x4] ss:$16 sps:$4 sm:$0xff]   ;;  %v2635_v58 = vld [vmem:[#allocation7 + $0xc] ss:$16 sps:$4 sm:$0xff]  }
 0x12f   : > { %v506_v0 = vmul.f32 0.0078125, %v484_v62  ;;  %v536_v1 = vmul.f32 %v3337_v59, %v3337_v59  ;;  %v507_v2 = vmul.f32 0.0078125, %v486_v63  ;;  %v537_v7 = vmul.f32 %v3340_v60, %v3340_v60  ;;  %912 = vmatprep.subr.bf16.mxu0 %v2600_v22  ;;  %1025 = vmatprep.subr.bf16.mxu1 %v2602_v23 }
 0x130   : > { %938 = vmatprep.mubr.bf16.mxu0 %v2978_v56  ;;  %1051 = vmatprep.mubr.bf16.mxu1 %v2978_v56 }
 0x131   : > { %v3347_v5 = vsub.f32 %v3279_v10, %v506_v0  ;;  %558 = vadd.xlane.f32.xlu1 %v535_v61  ;;  %560 = vadd.xlane.f32.xlu0 %v536_v1  ;;  %v3350_v6 = vsub.f32 %v3282_v11, %v507_v2 }
 0x132   : > { %v488_v16 = vpop.xlane.xlu0 %487  ;;  %v490_v17 = vpop.xlane.xlu1 %489  ;;  %913 = vmatpush1.bf16.msra.mxu0 %v2604_v26  ;;  %1026 = vmatpush1.bf16.msra.mxu1 %v2605_v27  ;;  %v3384_v27 = vld [vmem:[%s3863_s1] ss:$0 sm:$0xff] }
 0x133   : > { %v508_v18 = vmul.f32 0.0078125, %v488_v16  ;;  %v538_v19 = vmul.f32 %v3347_v5, %v3347_v5  ;;  %v509_v10 = vmul.f32 0.0078125, %v490_v17  ;;  %v539_v21 = vmul.f32 %v3350_v6, %v3350_v6  ;;  %914 = vmatprep.subr.bf16.mxu0 %v2606_v34  ;;  %1027 = vmatprep.subr.bf16.mxu1 %v2608_v37 }
 0x135   : > { %v3357_v20 = vsub.f32 %v3287_v12, %v508_v18  ;;  %562 = vadd.xlane.f32.xlu1 %v537_v7  ;;  %564 = vadd.xlane.f32.xlu0 %v538_v19  ;;  %v3360_v11 = vsub.f32 %v3290_v13, %v509_v10 }
 0x136   : > { %v492_v24 = vpop.xlane.xlu0 %491  ;;  %v494_v25 = vpop.xlane.xlu1 %493  ;;  %915 = vmatpush1.bf16.msra.mxu0 %v2610_v38  ;;  %1028 = vmatpush1.bf16.msra.mxu1 %v2611_v39 }
 0x137   : > { %v510_v30 = vmul.f32 0.0078125, %v492_v24  ;;  %v540_v31 = vmul.f32 %v3357_v20, %v3357_v20  ;;  %v511_v12 = vmul.f32 0.0078125, %v494_v25  ;;  %v541_v33 = vmul.f32 %v3360_v11, %v3360_v11  ;;  %1029 = vmatprep.subr.bf16.mxu1 %v2614_v41 }
 0x139   : > { %v3367_v13 = vsub.f32 %v3295_v14, %v510_v30  ;;  %566 = vadd.xlane.f32.xlu1 %v539_v21  ;;  %568 = vadd.xlane.f32.xlu0 %v540_v31  ;;  %v3370_v32 = vsub.f32 %v3298_v15, %v511_v12  ;;  %v2612_v15 = vld [vmem:[#allocation5 + $0xa4] ss:$16 sps:$4 sm:$0xff]  }
 0x13a   : > { %916 = vmatprep.subr.bf16.mxu0 %v2612_v15  ;;  %1030 = vmatpush1.bf16.msra.mxu1 %v2617_v45 }
 0x13b   : > { %v542_v40 = vmul.f32 %v3367_v13, %v3367_v13  ;;  %v543_v14 = vmul.f32 %v3370_v32, %v3370_v32  ;;  %917 = vmatpush1.bf16.msra.mxu0 %v2616_v42  ;;  %1031 = vmatprep.subr.bf16.mxu1 %v2620_v47 }
 0x13c   : > { %918 = vmatprep.subr.bf16.mxu0 %v2618_v46 }
 0x13d   : > { %570 = vadd.xlane.f32.xlu1 %v541_v33  ;;  %572 = vadd.xlane.f32.xlu0 %v542_v40 }
 0x13e   : > { %1032 = vmatpush1.bf16.msra.mxu1 %v2623_v49  ;;  %v2633_v49 = vld [vmem:[#allocation7 + $0x8] ss:$16 sps:$4 sm:$0xff]  }
 0x13f   : > { %919 = vmatpush1.bf16.msra.mxu0 %v2622_v48  ;;  %1033 = vmatprep.subr.bf16.mxu1 %v2626_v53  ;;  %v2630_v48 = vld [vmem:[#allocation7] ss:$16 sps:$4 sm:$0xff]  }
 0x140   : > { %920 = vmatprep.subr.bf16.mxu0 %v2624_v50 }
 0x141   : > { %574 = vadd.xlane.f32.xlu1 %v543_v14 }
 0x142   : > { %1034 = vmatpush1.bf16.msra.mxu1 %v2629_v55 }
 0x143   : > { %921 = vmatpush1.bf16.msra.mxu0 %v2628_v54  ;;  %1501 = vmatprep.subr.bf16.mxu1 %v2635_v58 }
 0x144   : > { %1388 = vmatprep.subr.bf16.mxu0 %v2632_v57  ;;  %v2638_v57 = vld [vmem:[#allocation7 + $0x24] ss:$16 sps:$4 sm:$0xff]  }
 0x1ae   : > { %v545_v61 = vpop.xlane.xlu0 %544 }
 0x1af   : > { %v576_v62 = vmul.f32 0.0078125, %v545_v61 }
 0x1b1   : > { %v592_v63 = vadd.f32 1e-05, %v576_v62  ;;  %v2636_v62 = vld [vmem:[#allocation7 + $0x20] ss:$16 sps:$4 sm:$0xff]  }
 0x1b2   : > { %v547_v0 = vpop.xlane.xlu1 %546  ;;  %v549_v1 = vpop.xlane.xlu0 %548 }
 0x1b3   : > { %2686 = vrsqrt.f32 %v592_v63  ;;  %v577_v2 = vmul.f32 0.0078125, %v547_v0  ;;  %v578_v3 = vmul.f32 0.0078125, %v549_v1  ;;  %v2639_v63 = vld [vmem:[#allocation7 + $0x28] ss:$16 sps:$4 sm:$0xff]  }
 0x1b5   : > { %v593_v4 = vadd.f32 1e-05, %v577_v2  ;;  %v594_v7 = vadd.f32 1e-05, %v578_v3  ;;  %v2644_v3 = vld [vmem:[#allocation7 + $0x44] ss:$16 sps:$4 sm:$0xff]  }
 0x1b6   : > { %v551_v8 = vpop.xlane.xlu1 %550  ;;  %v553_v9 = vpop.xlane.xlu0 %552 }
 0x1b7   : > { %2688 = vrsqrt.f32 %v593_v4  ;;  %v579_v16 = vmul.f32 0.0078125, %v551_v8  ;;  %v580_v18 = vmul.f32 0.0078125, %v553_v9  ;;  %v2647_v4 = vld [vmem:[#allocation7 + $0x4c] ss:$16 sps:$4 sm:$0xff]  }
 0x1b8   : > { %2690 = vrsqrt.f32 %v594_v7 }
 0x1b9   : > { %v595_v17 = vadd.f32 1e-05, %v579_v16  ;;  %v596_v22 = vadd.f32 1e-05, %v580_v18 }
 0x1ba   : > { %v555_v19 = vpop.xlane.xlu1 %554  ;;  %v557_v25 = vpop.xlane.xlu0 %556 }
 0x1bb   : > { %2692 = vrsqrt.f32 %v595_v17  ;;  %v581_v10 = vmul.f32 0.0078125, %v555_v19  ;;  %v582_v12 = vmul.f32 0.0078125, %v557_v25  ;;  %v2642_v19 = vld [vmem:[#allocation7 + $0x40] ss:$16 sps:$4 sm:$0xff]  }
 0x1bd   : > { %v2687_v21 = vpop.eup %2686  ;;  %v597_v23 = vadd.f32 1e-05, %v581_v10  ;;  %v598_v15 = vadd.f32 1e-05, %v582_v12  ;;  %v2645_v10 = vld [vmem:[#allocation7 + $0x48] ss:$16 sps:$4 sm:$0xff]  }
 0x1be   : > { %v624_v24 = vmul.f32 %v2687_v21, %v3304_v28  ;;  %v559_v26 = vpop.xlane.xlu1 %558  ;;  %v3391_v28 = vld [vmem:[%s3864_s2] ss:$0 sm:$0xff]  ;;  %v561_v45 = vpop.xlane.xlu0 %560 }
 0x1bf   : > { %2694 = vrsqrt.f32 %v597_v23  ;;  %v583_v30 = vmul.f32 0.0078125, %v559_v26  ;;  %v584_v55 = vmul.f32 0.0078125, %v561_v45  ;;  %v2650_v23 = vld [vmem:[#allocation7 + $0x64] ss:$16 sps:$4 sm:$0xff]   ;;  %v2654_v45 = vld [vmem:[#allocation7 + $0x80] ss:$16 sps:$4 sm:$0xff]  }
 0x1c0   : > { %2696 = vrsqrt.f32 %v596_v22  ;;  %v646_v33 = vmul.f32 %v3384_v27, %v624_v24 }
 0x1c1   : > { %v2689_v31 = vpop.eup %2688  ;;  %v599_v38 = vadd.f32 1e-05, %v583_v30  ;;  %v600_v7 = vadd.f32 1e-05, %v584_v55 }
 0x1c2   : > { %v625_v34 = vmul.f32 %v2689_v31, %v3310_v35  ;;  %v2691_v37 = vpop.eup %2690  ;;  %v563_v40 = vpop.xlane.xlu1 %562  ;;  %v668_v46 = vadd.f32 %v3391_v28, %v646_v33  ;;  %v2648_v33 = vld [vmem:[#allocation7 + $0x60] ss:$16 sps:$4 sm:$0xff]  }
 0x1c3   : > { %v626_v41 = vmul.f32 %v2691_v37, %v3306_v29  ;;  %2698 = vrsqrt.f32 %v599_v38  ;;  %v585_v47 = vmul.f32 0.0078125, %v563_v40  ;;  %v2641_v29 = vld [vmem:[#allocation7 + $0x2c] ss:$16 sps:$4 sm:$0xff]   ;;  %v565_v9 = vpop.xlane.xlu0 %564  ;;  %v2656_v38 = vld [vmem:[#allocation7 + $0x84] ss:$16 sps:$4 sm:$0xff]  }
 0x1c4   : > { %v647_v39 = vmul.f32 %v3384_v27, %v625_v34  ;;  %2700 = vrsqrt.f32 %v598_v15  ;;  %v586_v22 = vmul.f32 0.0078125, %v565_v9  ;;  %v2651_v34 = vld [vmem:[#allocation7 + $0x68] ss:$16 sps:$4 sm:$0xff]  }
 0x1c5   : > { %v2693_v14 = vpop.eup %2692  ;;  %v601_v61 = vadd.f32 1e-05, %v585_v47 }
 0x1c6   : > { %v627_v42 = vmul.f32 %v2693_v14, %v3312_v36  ;;  %v669_v35 = vadd.f32 %v3391_v28, %v647_v39  ;;  %v648_v36 = vmul.f32 %v3384_v27, %v626_v41  ;;  %v567_v1 = vpop.xlane.xlu1 %566  ;;  %v602_v37 = vadd.f32 1e-05, %v586_v22  ;;  %v2659_v39 = vld [vmem:[#allocation7 + $0x8c] ss:$16 sps:$4 sm:$0xff]  }
 0x1c7   : > { %2702 = vrsqrt.f32 %v601_v61  ;;  %v587_v17 = vmul.f32 0.0078125, %v567_v1  ;;  %v569_v14 = vpop.xlane.xlu0 %568 }
 0x1c8   : > { %v649_v50 = vmul.f32 %v3384_v27, %v627_v42  ;;  %v3399_v53 = vpack.c.bf16 %v669_v35, %v668_v46  ;;  %v670_v16 = vadd.f32 %v3391_v28, %v648_v36  ;;  %2704 = vrsqrt.f32 %v600_v7  ;;  %v2657_v46 = vld [vmem:[#allocation7 + $0x88] ss:$16 sps:$4 sm:$0xff]   ;;  %v2660_v36 = vld [vmem:[#allocation7 + $0xa0] ss:$16 sps:$4 sm:$0xff]  }
 0x1c9   : > { %v2695_v54 = vpop.eup %2694  ;;  %v603_v26 = vadd.f32 1e-05, %v587_v17  ;;  %v588_v47 = vmul.f32 0.0078125, %v569_v14  ;;  %v2666_v7 = vld [vmem:[#allocation7 + $0xc0] ss:$16 sps:$4 sm:$0xff]  }
 0x1ca   : > { %939 = vmatmul.mubr.bf16.vlgmr.msra.gmra.mrb[0].mxu0 %v3399_v53  ;;  %1052 = vmatmul.mubr.bf16.vlgmr.msra.gmra.mrb[0].mxu1 %v3399_v53  ;;  %v2697_v58 = vpop.eup %2696  ;;  %v629_v0 = vmul.f32 %v2695_v54, %v3320_v44  ;;  %v671_v2 = vadd.f32 %v3391_v28, %v649_v50  ;;  %v571_v31 = vpop.xlane.xlu1 %570  ;;  %v2674_v17 = vld [vmem:[#allocation7 + $0xe4] ss:$16 sps:$4 sm:$0xff]  }
 0x1cb   : > { %1389 = vmatpush1.bf16.msra.mxu0 %v2630_v48  ;;  %1502 = vmatpush1.bf16.msra.mxu1 %v2633_v49  ;;  %v628_v8 = vmul.f32 %v2697_v58, %v3318_v43  ;;  %v2653_v43 = vld [vmem:[#allocation7 + $0x6c] ss:$16 sps:$4 sm:$0xff]   ;;  %2706 = vrsqrt.f32 %v603_v26  ;;  %v589_v41 = vmul.f32 0.0078125, %v571_v31  ;;  %v2662_v48 = vld [vmem:[#allocation7 + $0xa4] ss:$16 sps:$4 sm:$0xff]   ;;  %v573_v1 = vpop.xlane.xlu0 %572 }
 0x1cc   : > { %948 = vmatprep.mubr.bf16.mxu0 %v2978_v56  ;;  %1061 = vmatprep.mubr.bf16.mxu1 %v2978_v56  ;;  %v651_v44 = vmul.f32 %v3384_v27, %v629_v0  ;;  %v3411_v18 = vpack.c.bf16 %v671_v2, %v670_v16  ;;  %2708 = vrsqrt.f32 %v602_v37  ;;  %v2663_v58 = vld [vmem:[#allocation7 + $0xa8] ss:$16 sps:$4 sm:$0xff]   ;;  %v604_v61 = vadd.f32 1e-05, %v588_v47 }
 0x1cd   : > { %1390 = vmatprep.subr.bf16.mxu0 %v2638_v57  ;;  %1503 = vmatprep.subr.bf16.mxu1 %v2641_v29  ;;  %v2699_v21 = vpop.eup %2698  ;;  %v650_v24 = vmul.f32 %v3384_v27, %v628_v8  ;;  %v605_v54 = vadd.f32 1e-05, %v589_v41  ;;  %v2669_v8 = vld [vmem:[#allocation7 + $0xc8] ss:$16 sps:$4 sm:$0xff]   ;;  %v590_v16 = vmul.f32 0.0078125, %v573_v1 }
 0x1ce   : > { %v2701_v25 = vpop.eup %2700  ;;  %v631_v30 = vmul.f32 %v2699_v21, %v3330_v52  ;;  %v673_v12 = vadd.f32 %v3391_v28, %v651_v44  ;;  %v575_v57 = vpop.xlane.xlu1 %574 }
 0x1cf   : > { %1391 = vmatpush1.bf16.msra.mxu0 %v2636_v62  ;;  %1504 = vmatpush1.bf16.msra.mxu1 %v2639_v63  ;;  %v630_v40 = vmul.f32 %v2701_v25, %v3327_v51  ;;  %v672_v15 = vadd.f32 %v3391_v28, %v650_v24  ;;  %v2665_v51 = vld [vmem:[#allocation7 + $0xac] ss:$16 sps:$4 sm:$0xff]   ;;  %v2668_v62 = vld [vmem:[#allocation7 + $0xc4] ss:$16 sps:$4 sm:$0xff]   ;;  %2710 = vrsqrt.f32 %v605_v54  ;;  %v606_v24 = vadd.f32 1e-05, %v590_v16 }
 0x1d0   : > { %1392 = vmatprep.subr.bf16.mxu0 %v2644_v3  ;;  %1505 = vmatprep.subr.bf16.mxu1 %v2647_v4  ;;  %v653_v52 = vmul.f32 %v3384_v27, %v631_v30  ;;  %v2671_v63 = vld [vmem:[#allocation7 + $0xcc] ss:$16 sps:$4 sm:$0xff]   ;;  %v591_v3 = vmul.f32 0.0078125, %v575_v57  ;;  %2712 = vrsqrt.f32 %v604_v61  ;;  %v2678_v25 = vld [vmem:[#allocation8] sm:$0xff]  }
 0x1d1   : > { %v3423_v42 = vpack.c.bf16 %v673_v12, %v672_v15  ;;  %v2703_v35 = vpop.eup %2702  ;;  %v652_v49 = vmul.f32 %v3384_v27, %v630_v40  ;;  %v2683_v54 = vld [vmem:[#allocation8 + $0x28] sm:$0xff]   ;;  %v2685_v57 = vld [vmem:[#allocation8 + $0x38] sm:$0xff]  }
 0x1d2   : > { %949 = vmatmul.mubr.bf16.gmra.mrb[4].mxu0 %v3411_v18  ;;  %1062 = vmatmul.mubr.bf16.gmra.mrb[4].mxu1 %v3411_v18  ;;  %v2705_v50 = vpop.eup %2704  ;;  %v633_v55 = vmul.f32 %v2703_v35, %v3340_v60  ;;  %v675_v29 = vadd.f32 %v3391_v28, %v653_v52 }
 0x1d3   : > { %958 = vmatprep.mubr.bf16.mxu0 %v2978_v56  ;;  %1071 = vmatprep.mubr.bf16.mxu1 %v2978_v56  ;;  %v632_v0 = vmul.f32 %v2705_v50, %v3337_v59  ;;  %v674_v2 = vadd.f32 %v3391_v28, %v652_v49  ;;  %v2677_v59 = vld [vmem:[#allocation7 + $0xec] ss:$16 sps:$4 sm:$0xff]   ;;  %v2682_v50 = vld [vmem:[#allocation8 + $0x20] sm:$0xff]  }
 0x1d4   : > { %1393 = vmatpush1.bf16.msra.mxu0 %v2642_v19  ;;  %1506 = vmatpush1.bf16.msra.mxu1 %v2645_v10  ;;  %v655_v60 = vmul.f32 %v3384_v27, %v633_v55  ;;  %v607_v10 = vadd.f32 1e-05, %v591_v3  ;;  %v2681_v49 = vld [vmem:[#allocation8 + $0x18] sm:$0xff]   ;;  %v2684_v55 = vld [vmem:[#allocation8 + $0x30] sm:$0xff]  }
 0x1d5   : > { %1394 = vmatprep.subr.bf16.mxu0 %v2650_v23  ;;  %1507 = vmatprep.subr.bf16.mxu1 %v2653_v43  ;;  %v3435_v4 = vpack.c.bf16 %v675_v29, %v674_v2  ;;  %v2707_v9 = vpop.eup %2706  ;;  %v654_v44 = vmul.f32 %v3384_v27, %v632_v0  ;;  %v2672_v23 = vld [vmem:[#allocation7 + $0xe0] ss:$16 sps:$4 sm:$0xff]   ;;  %v2675_v43 = vld [vmem:[#allocation7 + $0xe8] ss:$16 sps:$4 sm:$0xff]  }
 0x1d6   : > { %v2709_v19 = vpop.eup %2708  ;;  %v635_v21 = vmul.f32 %v2707_v9, %v3350_v6  ;;  %v677_v22 = vadd.f32 %v3391_v28, %v655_v60  ;;  %2714 = vrsqrt.f32 %v607_v10 }
 0x1d7   : > { %v634_v26 = vmul.f32 %v2709_v19, %v3347_v5  ;;  %v676_v30 = vadd.f32 %v3391_v28, %v654_v44  ;;  %2716 = vrsqrt.f32 %v606_v24 }
 0x1d8   : > { %1395 = vmatpush1.bf16.msra.mxu0 %v2648_v33  ;;  %1508 = vmatpush1.bf16.msra.mxu1 %v2651_v34  ;;  %v657_v31 = vmul.f32 %v3384_v27, %v635_v21 }
 0x1d9   : > { %1396 = vmatprep.subr.bf16.mxu0 %v2656_v38  ;;  %1509 = vmatprep.subr.bf16.mxu1 %v2659_v39  ;;  %v3447_v12 = vpack.c.bf16 %v677_v22, %v676_v30  ;;  %v2711_v6 = vpop.eup %2710  ;;  %v656_v33 = vmul.f32 %v3384_v27, %v634_v26 }
 0x1da   : > { %959 = vmatmul.mubr.bf16.gmra.mrb[8].mxu0 %v3423_v42  ;;  %1072 = vmatmul.mubr.bf16.gmra.mrb[8].mxu1 %v3423_v42  ;;  %v2713_v5 = vpop.eup %2712  ;;  %v637_v34 = vmul.f32 %v2711_v6, %v3360_v11  ;;  %v679_v37 = vadd.f32 %v3391_v28, %v657_v31 }
 0x1db   : > { %968 = vmatprep.mubr.bf16.mxu0 %v2978_v56  ;;  %1081 = vmatprep.mubr.bf16.mxu1 %v2978_v56  ;;  %v636_v38 = vmul.f32 %v2713_v5, %v3357_v20  ;;  %v678_v39 = vadd.f32 %v3391_v28, %v656_v33 }
 0x1dc   : > { %1397 = vmatpush1.bf16.msra.mxu0 %v2654_v45  ;;  %1510 = vmatpush1.bf16.msra.mxu1 %v2657_v46  ;;  %v659_v40 = vmul.f32 %v3384_v27, %v637_v34 }
 0x1dd   : > { %1398 = vmatprep.subr.bf16.mxu0 %v2662_v48  ;;  %1511 = vmatprep.subr.bf16.mxu1 %v2665_v51  ;;  %v3459_v14 = vpack.c.bf16 %v679_v37, %v678_v39  ;;  %v658_v41 = vmul.f32 %v3384_v27, %v636_v38 }
 0x1de   : > { %v681_v11 = vadd.f32 %v3391_v28, %v659_v40 }
 0x1df   : > { %v680_v46 = vadd.f32 %v3391_v28, %v658_v41 }
 0x1e0   : > { %1399 = vmatpush1.bf16.msra.mxu0 %v2660_v36  ;;  %1512 = vmatpush1.bf16.msra.mxu1 %v2663_v58  ;;  %v2715_v15 = vpop.eup %2714 }
 0x1e1   : > { %1400 = vmatprep.subr.bf16.mxu0 %v2668_v62  ;;  %1513 = vmatprep.subr.bf16.mxu1 %v2671_v63  ;;  %v2717_v52 = vpop.eup %2716  ;;  %v639_v20 = vmul.f32 %v2715_v15, %v3370_v32  ;;  %v3471_v47 = vpack.c.bf16 %v681_v11, %v680_v46 }
 0x1e2   : > { %969 = vmatmul.mubr.bf16.gmra.mrb[12].mxu0 %v3435_v4  ;;  %1082 = vmatmul.mubr.bf16.gmra.mrb[12].mxu1 %v3435_v4  ;;  %v638_v45 = vmul.f32 %v2717_v52, %v3367_v13 }
 0x1e3   : > { %978 = vmatprep.mubr.bf16.mxu0 %v2978_v56  ;;  %1091 = vmatprep.mubr.bf16.mxu1 %v2978_v56  ;;  %v661_v35 = vmul.f32 %v3384_v27, %v639_v20 }
 0x1e4   : > { %1401 = vmatpush1.bf16.msra.mxu0 %v2666_v7  ;;  %1514 = vmatpush1.bf16.msra.mxu1 %v2669_v8  ;;  %v660_v48 = vmul.f32 %v3384_v27, %v638_v45  ;;  %v2679_v27 = vld [vmem:[#allocation8 + $0x8] sm:$0xff]  }
 0x1e5   : > { %1402 = vmatprep.subr.bf16.mxu0 %v2674_v17  ;;  %1515 = vmatprep.subr.bf16.mxu1 %v2677_v59  ;;  %v683_v32 = vadd.f32 %v3391_v28, %v661_v35 }
 0x1e6   : > { %v682_v13 = vadd.f32 %v3391_v28, %v660_v48  ;;  %v2680_v28 = vld [vmem:[#allocation8 + $0x10] sm:$0xff]  }
 0x1e8   : > { %1403 = vmatpush1.bf16.msra.mxu0 %v2672_v23  ;;  %1516 = vmatpush1.bf16.msra.mxu1 %v2675_v43  ;;  %v3480_v51 = vpack.c.bf16 %v683_v32, %v682_v13 }
 0x1e9   : > { %2434 = vmatprep.subr.bf16.mxu0 %v2678_v25  ;;  %2466 = vmatprep.subr.bf16.mxu1 %v2678_v25 }
 0x1ea   : > { %979 = vmatmul.mubr.bf16.gmra.mrb[16].mxu0 %v3447_v12  ;;  %1092 = vmatmul.mubr.bf16.gmra.mrb[16].mxu1 %v3447_v12 }
 0x1eb   : > { %988 = vmatprep.mubr.bf16.mxu0 %v2978_v56  ;;  %1101 = vmatprep.mubr.bf16.mxu1 %v2978_v56 }
 0x1f2   : > { %989 = vmatmul.mubr.bf16.gmra.mrb[20].mxu0 %v3459_v14  ;;  %1102 = vmatmul.mubr.bf16.gmra.mrb[20].mxu1 %v3459_v14 }
 0x1f3   : > { %998 = vmatprep.mubr.bf16.mxu0 %v2978_v56  ;;  %1111 = vmatprep.mubr.bf16.mxu1 %v2978_v56 }
 0x1fa   : > { %999 = vmatmul.mubr.bf16.gmra.mrb[24].mxu0 %v3471_v47  ;;  %1112 = vmatmul.mubr.bf16.gmra.mrb[24].mxu1 %v3471_v47 }
 0x1fb   : > { %1008 = vmatprep.mubr.bf16.mxu0 %v2978_v56  ;;  %1121 = vmatprep.mubr.bf16.mxu1 %v2978_v56 }
 0x202   : > { %1009 = vmatmul.mubr.bf16.gmra.mrb[28].mxu0 %v3480_v51  ;;  %1122 = vmatmul.mubr.bf16.gmra.mrb[28].mxu1 %v3480_v51 }
 0x203   : > { %1420 = vmatprep.mubr.bf16.mxu0 %v2978_v56  ;;  %1533 = vmatprep.mubr.bf16.mxu1 %v2978_v56 }
 0x20a   : > { %1421 = vmatmul.mubr.bf16.vlgmr.msra.gmra.mrb[32].mxu0 %v3399_v53  ;;  %1534 = vmatmul.mubr.bf16.vlgmr.msra.gmra.mrb[32].mxu1 %v3399_v53 }
 0x20b   : > { %2435 = vmatpush3.bf16.msra.mxu0 %v2678_v25  ;;  %2474 = vmatpush3.bf16.msra.mxu1 %v2678_v25 }
 0x20c   : > { %1430 = vmatprep.mubr.bf16.mxu0 %v2978_v56  ;;  %1543 = vmatprep.mubr.bf16.mxu1 %v2978_v56 }
 0x20d   : > { %2436 = vmatprep.subr.bf16.mxu0 %v2679_v27  ;;  %2467 = vmatprep.subr.bf16.mxu1 %v2679_v27 }
 0x20f   : > { %2437 = vmatpush3.bf16.msra.mxu0 %v2679_v27  ;;  %2475 = vmatpush3.bf16.msra.mxu1 %v2679_v27 }
 0x210   : > { %2438 = vmatprep.subr.bf16.mxu0 %v2680_v28  ;;  %2468 = vmatprep.subr.bf16.mxu1 %v2680_v28 }
 0x212   : > { %1431 = vmatmul.mubr.bf16.gmra.mrb[36].mxu0 %v3411_v18  ;;  %1544 = vmatmul.mubr.bf16.gmra.mrb[36].mxu1 %v3411_v18 }
 0x213   : > { %1440 = vmatprep.mubr.bf16.mxu0 %v2978_v56  ;;  %1553 = vmatprep.mubr.bf16.mxu1 %v2978_v56 }
 0x214   : > { %2439 = vmatpush3.bf16.msra.mxu0 %v2680_v28  ;;  %2476 = vmatpush3.bf16.msra.mxu1 %v2680_v28 }
 0x215   : > { %2440 = vmatprep.subr.bf16.mxu0 %v2681_v49  ;;  %2469 = vmatprep.subr.bf16.mxu1 %v2681_v49 }
 0x218   : > { %2441 = vmatpush3.bf16.msra.mxu0 %v2681_v49  ;;  %2477 = vmatpush3.bf16.msra.mxu1 %v2681_v49 }
 0x219   : > { %2442 = vmatprep.subr.bf16.mxu0 %v2682_v50  ;;  %2470 = vmatprep.subr.bf16.mxu1 %v2682_v50 }
 0x21a   : > { %1441 = vmatmul.mubr.bf16.gmra.mrb[40].mxu0 %v3423_v42  ;;  %1554 = vmatmul.mubr.bf16.gmra.mrb[40].mxu1 %v3423_v42 }
 0x21b   : > { %1450 = vmatprep.mubr.bf16.mxu0 %v2978_v56  ;;  %1563 = vmatprep.mubr.bf16.mxu1 %v2978_v56 }
 0x21c   : > { %2443 = vmatpush3.bf16.msra.mxu0 %v2682_v50  ;;  %2478 = vmatpush3.bf16.msra.mxu1 %v2682_v50 }
 0x21d   : > { %2444 = vmatprep.subr.bf16.mxu0 %v2683_v54  ;;  %2471 = vmatprep.subr.bf16.mxu1 %v2683_v54 }
 0x220   : > { %2445 = vmatpush3.bf16.msra.mxu0 %v2683_v54  ;;  %2479 = vmatpush3.bf16.msra.mxu1 %v2683_v54 }
 0x221   : > { %2446 = vmatprep.subr.bf16.mxu0 %v2684_v55  ;;  %2472 = vmatprep.subr.bf16.mxu1 %v2684_v55 }
 0x222   : > { %1451 = vmatmul.mubr.bf16.gmra.mrb[44].mxu0 %v3435_v4  ;;  %1564 = vmatmul.mubr.bf16.gmra.mrb[44].mxu1 %v3435_v4 }
 0x223   : > { %1460 = vmatprep.mubr.bf16.mxu0 %v2978_v56  ;;  %1573 = vmatprep.mubr.bf16.mxu1 %v2978_v56 }
 0x224   : > { %2447 = vmatpush3.bf16.msra.mxu0 %v2684_v55  ;;  %2480 = vmatpush3.bf16.msra.mxu1 %v2684_v55 }
 0x225   : > { %2448 = vmatprep.subr.bf16.mxu0 %v2685_v57  ;;  %2473 = vmatprep.subr.bf16.mxu1 %v2685_v57 }
 0x228   : > { %2449 = vmatpush3.bf16.msra.mxu0 %v2685_v57  ;;  %2481 = vmatpush3.bf16.msra.mxu1 %v2685_v57 }
 0x22a   : > { %1461 = vmatmul.mubr.bf16.gmra.mrb[48].mxu0 %v3447_v12  ;;  %1574 = vmatmul.mubr.bf16.gmra.mrb[48].mxu1 %v3447_v12 }
 0x22b   : > { %1470 = vmatprep.mubr.bf16.mxu0 %v2978_v56  ;;  %1583 = vmatprep.mubr.bf16.mxu1 %v2978_v56 }
 0x232   : > { %1471 = vmatmul.mubr.bf16.gmra.mrb[52].mxu0 %v3459_v14  ;;  %1584 = vmatmul.mubr.bf16.gmra.mrb[52].mxu1 %v3459_v14 }
 0x233   : > { %1480 = vmatprep.mubr.bf16.mxu0 %v2978_v56  ;;  %1593 = vmatprep.mubr.bf16.mxu1 %v2978_v56 }
 0x23a   : > { %1481 = vmatmul.mubr.bf16.gmra.mrb[56].mxu0 %v3471_v47  ;;  %1594 = vmatmul.mubr.bf16.gmra.mrb[56].mxu1 %v3471_v47 }
 0x23b   : > { %1490 = vmatprep.mubr.bf16.mxu0 %v2978_v56  ;;  %1603 = vmatprep.mubr.bf16.mxu1 %v2978_v56  ;;  %v726_v56 = vlaneseq }
 0x23d   : > { %v727_v29 = vshrl.u32 %v726_v56, 7 }
 0x23f   : > { %v728_v36 = vsub.s32 0, %v727_v29  ;;  %v736_v58 = vsub.s32 2, %v727_v29  ;;  %v732_v61 = vsub.s32 1, %v727_v29 }
 0x242   : > { %1491 = vmatmul.mubr.bf16.gmra.mrb[60].mxu0 %v3480_v51  ;;  %1604 = vmatmul.mubr.bf16.gmra.mrb[60].mxu1 %v3480_v51 }
 0x243   : > { %2450 = vmatprep.mubr.bf16.mxu0 %v3399_v53  ;;  %2458 = vmatprep.mubr.bf16.mxu1 %v3447_v12  ;;  %v724_v53 = vld [vmem:[%s3866_s4] sm:$0xf] }
 0x244   : > { %v3528_v62 = vrot.slane %v724_v53, %v728_v36  ;;  %v3532_v63 = vrot.slane %v724_v53, %v732_v61 }
 0x24a   : > { %2451 = vmatmul.mubr.bf16.vlgmr.msra.gmra.mrb[64].mxu0 %v3411_v18  ;;  %2459 = vmatmul.mubr.bf16.vlgmr.msra.gmra.mrb[64].mxu1 %v3459_v14  ;;  %v740_v18 = vsub.s32 3, %v727_v29 }
 0x24b   : > { %2454 = vmatprep.mubr.bf16.mxu0 %v3423_v42  ;;  %2462 = vmatprep.mubr.bf16.mxu1 %v3471_v47  ;;  %v3530_v42 = vrot.slane %v724_v53, %v736_v58 }
 0x24c   : > { %v3534_v0 = vrot.slane %v724_v53, %v740_v18 }
 0x252   : > { %2455 = vmatmul.mubr.bf16.gmra.mrb[68].mxu0 %v3435_v4  ;;  %2463 = vmatmul.mubr.bf16.gmra.mrb[68].mxu1 %v3480_v51 }
 0x29d   : > { %v940_v1 = vpop.f32.mrb[0].mxu0  ;;  %v1053_v2 = vpop.f32.mrb[0].mxu1 }
 0x29e   : > { %v941_v3 = vadd.f32 %v940_v1, %v3528_v62  ;;  %v1054_v60 = vadd.f32 %v1053_v2, %v3530_v42  ;;  %v942_v4 = vpop.f32.mrb[1].mxu0  ;;  %v1055_v7 = vpop.f32.mrb[1].mxu1 }
 0x29f   : > { %v943_v8 = vadd.f32 %v942_v4, %v3532_v63  ;;  %v1056_v9 = vadd.f32 %v1055_v7, %v3534_v0  ;;  %v944_v16 = vpop.f32.mrb[2].mxu0  ;;  %v1057_v17 = vpop.f32.mrb[2].mxu1 }
 0x2a0   : > { %1132 = vst [vmem:[%s3540_s23] sm:$0xff] %v941_v3  ;;  %1134 = vst [vmem:[%s3540_s23 + $0x10] sm:$0xff] %v1054_v60  ;;  %v945_v59 = vadd.f32 %v944_v16, %v3528_v62  ;;  %v1058_v44 = vadd.f32 %v1057_v17, %v3530_v42  ;;  %v946_v19 = vpop.f32.mrb[3].mxu0  ;;  %v1059_v10 = vpop.f32.mrb[3].mxu1 }
 0x2a1   : > { %1133 = vst [vmem:[%s3540_s23 + $0x8] sm:$0xff] %v943_v8  ;;  %1135 = vst [vmem:[%s3540_s23 + $0x18] sm:$0xff] %v1056_v9  ;;  %v947_v21 = vadd.f32 %v946_v19, %v3532_v63  ;;  %v1060_v22 = vadd.f32 %v1059_v10, %v3534_v0 }
 0x2a2   : > { %1136 = vst [vmem:[%s3540_s23 + $0x20] sm:$0xff] %v945_v59  ;;  %1138 = vst [vmem:[%s3540_s23 + $0x30] sm:$0xff] %v1058_v44 }
 0x2a3   : > { %1137 = vst [vmem:[%s3540_s23 + $0x28] sm:$0xff] %v947_v21  ;;  %1139 = vst [vmem:[%s3540_s23 + $0x38] sm:$0xff] %v1060_v22 }
 0x2a5   : > { %v950_v23 = vpop.f32.mrb[4].mxu0  ;;  %v1063_v43 = vpop.f32.mrb[4].mxu1 }
 0x2a6   : > { %v951_v24 = vadd.f32 %v950_v23, %v3528_v62  ;;  %v1064_v25 = vadd.f32 %v1063_v43, %v3530_v42  ;;  %v952_v26 = vpop.f32.mrb[5].mxu0  ;;  %v1065_v30 = vpop.f32.mrb[5].mxu1 }
 0x2a7   : > { %v953_v31 = vadd.f32 %v952_v26, %v3532_v63  ;;  %v1066_v12 = vadd.f32 %v1065_v30, %v3534_v0  ;;  %v954_v6 = vpop.f32.mrb[6].mxu0  ;;  %v1067_v33 = vpop.f32.mrb[6].mxu1 }
 0x2a8   : > { %1140 = vst [vmem:[%s3540_s23 + $0x40] sm:$0xff] %v951_v24  ;;  %1142 = vst [vmem:[%s3540_s23 + $0x50] sm:$0xff] %v1064_v25  ;;  %v955_v5 = vadd.f32 %v954_v6, %v3528_v62  ;;  %v1068_v34 = vadd.f32 %v1067_v33, %v3530_v42  ;;  %v956_v37 = vpop.f32.mrb[7].mxu0  ;;  %v1069_v38 = vpop.f32.mrb[7].mxu1 }
 0x2a9   : > { %1141 = vst [vmem:[%s3540_s23 + $0x48] sm:$0xff] %v953_v31  ;;  %1143 = vst [vmem:[%s3540_s23 + $0x58] sm:$0xff] %v1066_v12  ;;  %v957_v39 = vadd.f32 %v956_v37, %v3532_v63  ;;  %v1070_v40 = vadd.f32 %v1069_v38, %v3534_v0 }
 0x2aa   : > { %1144 = vst [vmem:[%s3540_s23 + $0x60] sm:$0xff] %v955_v5  ;;  %1146 = vst [vmem:[%s3540_s23 + $0x70] sm:$0xff] %v1068_v34 }
 0x2ab   : > { %1145 = vst [vmem:[%s3540_s23 + $0x68] sm:$0xff] %v957_v39  ;;  %1147 = vst [vmem:[%s3540_s23 + $0x78] sm:$0xff] %v1070_v40 }
 0x2ad   : > { %v960_v14 = vpop.f32.mrb[8].mxu0  ;;  %v1073_v15 = vpop.f32.mrb[8].mxu1 }
 0x2ae   : > { %v961_v41 = vadd.f32 %v960_v14, %v3528_v62  ;;  %v1074_v52 = vadd.f32 %v1073_v15, %v3530_v42  ;;  %v962_v20 = vpop.f32.mrb[9].mxu0  ;;  %v1075_v11 = vpop.f32.mrb[9].mxu1 }
 0x2af   : > { %v963_v45 = vadd.f32 %v962_v20, %v3532_v63  ;;  %v1076_v46 = vadd.f32 %v1075_v11, %v3534_v0  ;;  %v964_v35 = vpop.f32.mrb[10].mxu0  ;;  %v1077_v47 = vpop.f32.mrb[10].mxu1 }
 0x2b0   : > { %1148 = vst [vmem:[%s3540_s23 + $0x80] sm:$0xff] %v961_v41  ;;  %1150 = vst [vmem:[%s3540_s23 + $0x90] sm:$0xff] %v1074_v52  ;;  %v965_v48 = vadd.f32 %v964_v35, %v3528_v62  ;;  %v1078_v32 = vadd.f32 %v1077_v47, %v3530_v42  ;;  %v966_v13 = vpop.f32.mrb[11].mxu0  ;;  %v1079_v51 = vpop.f32.mrb[11].mxu1 }
 0x2b1   : > { %1149 = vst [vmem:[%s3540_s23 + $0x88] sm:$0xff] %v963_v45  ;;  %1151 = vst [vmem:[%s3540_s23 + $0x98] sm:$0xff] %v1076_v46  ;;  %v967_v27 = vadd.f32 %v966_v13, %v3532_v63  ;;  %v1080_v28 = vadd.f32 %v1079_v51, %v3534_v0 }
 0x2b2   : > { %1152 = vst [vmem:[%s3540_s23 + $0xa0] sm:$0xff] %v965_v48  ;;  %1154 = vst [vmem:[%s3540_s23 + $0xb0] sm:$0xff] %v1078_v32 }
 0x2b3   : > { %1153 = vst [vmem:[%s3540_s23 + $0xa8] sm:$0xff] %v967_v27  ;;  %1155 = vst [vmem:[%s3540_s23 + $0xb8] sm:$0xff] %v1080_v28 }
 0x2b5   : > { %v970_v49 = vpop.f32.mrb[12].mxu0  ;;  %v1083_v50 = vpop.f32.mrb[12].mxu1 }
 0x2b6   : > { %v971_v54 = vadd.f32 %v970_v49, %v3528_v62  ;;  %v1084_v55 = vadd.f32 %v1083_v50, %v3530_v42  ;;  %v972_v57 = vpop.f32.mrb[13].mxu0  ;;  %v1085_v56 = vpop.f32.mrb[13].mxu1 }
 0x2b7   : > { %v973_v29 = vadd.f32 %v972_v57, %v3532_v63  ;;  %v1086_v36 = vadd.f32 %v1085_v56, %v3534_v0  ;;  %v974_v58 = vpop.f32.mrb[14].mxu0  ;;  %v1087_v53 = vpop.f32.mrb[14].mxu1 }
 0x2b8   : > { %1156 = vst [vmem:[%s3540_s23 + $0xc0] sm:$0xff] %v971_v54  ;;  %1158 = vst [vmem:[%s3540_s23 + $0xd0] sm:$0xff] %v1084_v55  ;;  %v975_v61 = vadd.f32 %v974_v58, %v3528_v62  ;;  %v1088_v18 = vadd.f32 %v1087_v53, %v3530_v42  ;;  %v976_v1 = vpop.f32.mrb[15].mxu0  ;;  %v1089_v2 = vpop.f32.mrb[15].mxu1 }
 0x2b9   : > { %1157 = vst [vmem:[%s3540_s23 + $0xc8] sm:$0xff] %v973_v29  ;;  %1159 = vst [vmem:[%s3540_s23 + $0xd8] sm:$0xff] %v1086_v36  ;;  %v977_v3 = vadd.f32 %v976_v1, %v3532_v63  ;;  %v1090_v60 = vadd.f32 %v1089_v2, %v3534_v0 }
 0x2ba   : > { %1160 = vst [vmem:[%s3540_s23 + $0xe0] sm:$0xff] %v975_v61  ;;  %1162 = vst [vmem:[%s3540_s23 + $0xf0] sm:$0xff] %v1088_v18 }
 0x2bb   : > { %1161 = vst [vmem:[%s3540_s23 + $0xe8] sm:$0xff] %v977_v3  ;;  %1163 = vst [vmem:[%s3540_s23 + $0xf8] sm:$0xff] %v1090_v60 }
 0x2bd   : > { %v980_v4 = vpop.f32.mrb[16].mxu0  ;;  %v1093_v7 = vpop.f32.mrb[16].mxu1 }
 0x2be   : > { %v981_v8 = vadd.f32 %v980_v4, %v3528_v62  ;;  %v1094_v9 = vadd.f32 %v1093_v7, %v3530_v42  ;;  %v982_v16 = vpop.f32.mrb[17].mxu0  ;;  %v1095_v17 = vpop.f32.mrb[17].mxu1 }
 0x2bf   : > { %v983_v59 = vadd.f32 %v982_v16, %v3532_v63  ;;  %v1096_v44 = vadd.f32 %v1095_v17, %v3534_v0  ;;  %v984_v19 = vpop.f32.mrb[18].mxu0  ;;  %v1097_v10 = vpop.f32.mrb[18].mxu1 }
 0x2c0   : > { %1164 = vst [vmem:[%s3540_s23 + $0x100] sm:$0xff] %v981_v8  ;;  %1166 = vst [vmem:[%s3540_s23 + $0x110] sm:$0xff] %v1094_v9  ;;  %v985_v21 = vadd.f32 %v984_v19, %v3528_v62  ;;  %v1098_v22 = vadd.f32 %v1097_v10, %v3530_v42  ;;  %v986_v23 = vpop.f32.mrb[19].mxu0  ;;  %v1099_v43 = vpop.f32.mrb[19].mxu1 }
 0x2c1   : > { %1165 = vst [vmem:[%s3540_s23 + $0x108] sm:$0xff] %v983_v59  ;;  %1167 = vst [vmem:[%s3540_s23 + $0x118] sm:$0xff] %v1096_v44  ;;  %v987_v24 = vadd.f32 %v986_v23, %v3532_v63  ;;  %v1100_v25 = vadd.f32 %v1099_v43, %v3534_v0 }
 0x2c2   : > { %1168 = vst [vmem:[%s3540_s23 + $0x120] sm:$0xff] %v985_v21  ;;  %1170 = vst [vmem:[%s3540_s23 + $0x130] sm:$0xff] %v1098_v22 }
 0x2c3   : > { %1169 = vst [vmem:[%s3540_s23 + $0x128] sm:$0xff] %v987_v24  ;;  %1171 = vst [vmem:[%s3540_s23 + $0x138] sm:$0xff] %v1100_v25 }
 0x2c5   : > { %v990_v26 = vpop.f32.mrb[20].mxu0  ;;  %v1103_v30 = vpop.f32.mrb[20].mxu1 }
 0x2c6   : > { %v991_v31 = vadd.f32 %v990_v26, %v3528_v62  ;;  %v1104_v12 = vadd.f32 %v1103_v30, %v3530_v42  ;;  %v992_v6 = vpop.f32.mrb[21].mxu0  ;;  %v1105_v33 = vpop.f32.mrb[21].mxu1 }
 0x2c7   : > { %v993_v5 = vadd.f32 %v992_v6, %v3532_v63  ;;  %v1106_v34 = vadd.f32 %v1105_v33, %v3534_v0  ;;  %v994_v37 = vpop.f32.mrb[22].mxu0  ;;  %v1107_v38 = vpop.f32.mrb[22].mxu1 }
 0x2c8   : > { %1172 = vst [vmem:[%s3540_s23 + $0x140] sm:$0xff] %v991_v31  ;;  %1174 = vst [vmem:[%s3540_s23 + $0x150] sm:$0xff] %v1104_v12  ;;  %v995_v39 = vadd.f32 %v994_v37, %v3528_v62  ;;  %v1108_v40 = vadd.f32 %v1107_v38, %v3530_v42  ;;  %v996_v14 = vpop.f32.mrb[23].mxu0  ;;  %v1109_v15 = vpop.f32.mrb[23].mxu1 }
 0x2c9   : > { %1173 = vst [vmem:[%s3540_s23 + $0x148] sm:$0xff] %v993_v5  ;;  %1175 = vst [vmem:[%s3540_s23 + $0x158] sm:$0xff] %v1106_v34  ;;  %v997_v41 = vadd.f32 %v996_v14, %v3532_v63  ;;  %v1110_v52 = vadd.f32 %v1109_v15, %v3534_v0 }
 0x2ca   : > { %1176 = vst [vmem:[%s3540_s23 + $0x160] sm:$0xff] %v995_v39  ;;  %1178 = vst [vmem:[%s3540_s23 + $0x170] sm:$0xff] %v1108_v40 }
 0x2cb   : > { %1177 = vst [vmem:[%s3540_s23 + $0x168] sm:$0xff] %v997_v41  ;;  %1179 = vst [vmem:[%s3540_s23 + $0x178] sm:$0xff] %v1110_v52 }
 0x2cd   : > { %v1000_v20 = vpop.f32.mrb[24].mxu0  ;;  %v1113_v11 = vpop.f32.mrb[24].mxu1 }
 0x2ce   : > { %v1001_v45 = vadd.f32 %v1000_v20, %v3528_v62  ;;  %v1114_v46 = vadd.f32 %v1113_v11, %v3530_v42  ;;  %v1002_v35 = vpop.f32.mrb[25].mxu0  ;;  %v1115_v47 = vpop.f32.mrb[25].mxu1 }
 0x2cf   : > { %v1003_v48 = vadd.f32 %v1002_v35, %v3532_v63  ;;  %v1116_v32 = vadd.f32 %v1115_v47, %v3534_v0  ;;  %v1004_v13 = vpop.f32.mrb[26].mxu0  ;;  %v1117_v51 = vpop.f32.mrb[26].mxu1 }
 0x2d0   : > { %1180 = vst [vmem:[%s3540_s23 + $0x180] sm:$0xff] %v1001_v45  ;;  %1182 = vst [vmem:[%s3540_s23 + $0x190] sm:$0xff] %v1114_v46  ;;  %v1005_v27 = vadd.f32 %v1004_v13, %v3528_v62  ;;  %v1118_v28 = vadd.f32 %v1117_v51, %v3530_v42  ;;  %v1006_v49 = vpop.f32.mrb[27].mxu0  ;;  %v1119_v50 = vpop.f32.mrb[27].mxu1 }
 0x2d1   : > { %1181 = vst [vmem:[%s3540_s23 + $0x188] sm:$0xff] %v1003_v48  ;;  %1183 = vst [vmem:[%s3540_s23 + $0x198] sm:$0xff] %v1116_v32  ;;  %v1007_v54 = vadd.f32 %v1006_v49, %v3532_v63  ;;  %v1120_v55 = vadd.f32 %v1119_v50, %v3534_v0 }
 0x2d2   : > { %1184 = vst [vmem:[%s3540_s23 + $0x1a0] sm:$0xff] %v1005_v27  ;;  %1186 = vst [vmem:[%s3540_s23 + $0x1b0] sm:$0xff] %v1118_v28 }
 0x2d3   : > { %1185 = vst [vmem:[%s3540_s23 + $0x1a8] sm:$0xff] %v1007_v54  ;;  %1187 = vst [vmem:[%s3540_s23 + $0x1b8] sm:$0xff] %v1120_v55 }
 0x2d5   : > { %v1010_v57 = vpop.f32.mrb[28].mxu0  ;;  %v1123_v56 = vpop.f32.mrb[28].mxu1 }
 0x2d6   : > { %v1011_v29 = vadd.f32 %v1010_v57, %v3528_v62  ;;  %v1124_v36 = vadd.f32 %v1123_v56, %v3530_v42  ;;  %v1012_v58 = vpop.f32.mrb[29].mxu0  ;;  %v1125_v53 = vpop.f32.mrb[29].mxu1 }
 0x2d7   : > { %v1013_v61 = vadd.f32 %v1012_v58, %v3532_v63  ;;  %v1126_v18 = vadd.f32 %v1125_v53, %v3534_v0  ;;  %v1014_v1 = vpop.f32.mrb[30].mxu0  ;;  %v1127_v2 = vpop.f32.mrb[30].mxu1 }
 0x2d8   : > { %1188 = vst [vmem:[%s3540_s23 + $0x1c0] sm:$0xff] %v1011_v29  ;;  %1190 = vst [vmem:[%s3540_s23 + $0x1d0] sm:$0xff] %v1124_v36  ;;  %v1015_v3 = vadd.f32 %v1014_v1, %v3528_v62  ;;  %v1128_v60 = vadd.f32 %v1127_v2, %v3530_v42  ;;  %v1016_v4 = vpop.f32.mrb[31].mxu0  ;;  %v1129_v7 = vpop.f32.mrb[31].mxu1 }
 0x2d9   : > { %1189 = vst [vmem:[%s3540_s23 + $0x1c8] sm:$0xff] %v1013_v61  ;;  %1191 = vst [vmem:[%s3540_s23 + $0x1d8] sm:$0xff] %v1126_v18  ;;  %v1017_v8 = vadd.f32 %v1016_v4, %v3532_v63  ;;  %v1130_v62 = vadd.f32 %v1129_v7, %v3534_v0 }
 0x2da   : > { %1192 = vst [vmem:[%s3540_s23 + $0x1e0] sm:$0xff] %v1015_v3  ;;  %1194 = vst [vmem:[%s3540_s23 + $0x1f0] sm:$0xff] %v1128_v60 }
 0x2db   : > { %1193 = vst [vmem:[%s3540_s23 + $0x1e8] sm:$0xff] %v1017_v8  ;;  %1195 = vst [vmem:[%s3540_s23 + $0x1f8] sm:$0xff] %v1130_v62 }
 0x2dc   : > { %2845 = shalt.err (!%p2842_p4)
}
 0x2dd   : > { %s2846_s27 = scalar_lea.hbm %s3663_s24, 8192  ;;  %s2850_s13 = scalar_lea.hbm %s3870_s8, 16384 }
 0x2de   : > { %p2847_p9 = scmp.ne.s32.totalorder %s3663_s24, %s2846_s27  ;;  %p2851_p8 = scmp.lt.u32.totalorder %s3663_s24, %s3870_s8 }
 0x2df   : > { %p2852_p13 = scmp.lt.u32.totalorder %s2850_s13, %s2846_s27  ;;  %p2854_p10 = scmp.lt.u32.totalorder %s2846_s27, %s3663_s24 }
 0x2e0   : > { %p2848_p0 = pnand %p2847_p9, %p3190_p5 }
 0x2e1   : > { %p2853_p6 = por %p2852_p13, %p2851_p8 }
 0x2e2   : > { %p2849_p11 = pneg %p2848_p0 }
 0x2e3   : > { %p2855_p3 = por %p2854_p10, %p2853_p6 }
 0x2e5   : > { %p2856_p7 = pnand %p2855_p3, %p2849_p11 }
 0x2e7   : > { %2859 = shalt.err (!%p2856_p7)
}
 0x2e8   : > { %s2980_s29 = smov 512   ;;  %s2981_s18 = smov 32   ;;  %v1422_v42 = vpop.f32.mrb[32].mxu0  ;;  %v1535_v63 = vpop.f32.mrb[32].mxu1 }
 0x2e9   : > { %2496 = dma.vmem_to_hbm [thread:$0]  (%p3190_p5), %s3665_s11, 8192, %s3663_s24, %s2023_s21, %s2980_s29, %s2980_s29, %s2981_s18   ;;  %v1424_v0 = vpop.f32.mrb[33].mxu0  ;;  %v1537_v9 = vpop.f32.mrb[33].mxu1 }
 0x2ea   : > { %v2381_v16 = vpack.c.bf16 %v1424_v0, %v1422_v42  ;;  %v2382_v17 = vpack.c.bf16 %v1537_v9, %v1535_v63  ;;  %v1426_v59 = vpop.f32.mrb[34].mxu0  ;;  %v1539_v44 = vpop.f32.mrb[34].mxu1  ;;  %s3702_s30 = scalar_lea.vmem [#allocation11], %s2258_s19  ;;  %s2027_s11 = sand.u32 1, %s3064_s17  }
 0x2eb   : > { %v1428_v19 = vpop.f32.mrb[35].mxu0  ;;  %v1541_v10 = vpop.f32.mrb[35].mxu1  ;;  %s2416_s24 = sshll.u32 %s3064_s17, 12  ;;  %s2064_s19 = sshll.u32 %s3702_s30, 4  ;;  %s3742_s19 = int_to_ptr.vmem [resolvable:$true] %s2064_s19 }
 0x2ec   : > { %1806 = vst [vmem:[%s3702_s30] sm:$0xff] %v2381_v16  ;;  %1807 = vst [vmem:[%s3702_s30 + $0x8] sm:$0xff] %v2382_v17  ;;  %v2383_v21 = vpack.c.bf16 %v1428_v19, %v1426_v59  ;;  %v2384_v22 = vpack.c.bf16 %v1541_v10, %v1539_v44  ;;  %v1432_v23 = vpop.f32.mrb[36].mxu0  ;;  %v1545_v43 = vpop.f32.mrb[36].mxu1  ;;  %s3738_s23 = scalar_lea.hbm %s3871_s9, %s2416_s24  ;;  %s3898_s25 = sld [smem:[#allocation21_spill]] }
 0x2ed   : > { %v1434_v24 = vpop.f32.mrb[37].mxu0  ;;  %v1547_v25 = vpop.f32.mrb[37].mxu1  ;;  %s3751_s26 = scalar_lea.sflag [#allocation12], %s2027_s11  ;;  %s2860_s29 = scalar_lea.vmem %s3742_s19, 4096 }
 0x2ee   : > { %1808 = vst [vmem:[%s3702_s30 + $0x10] sm:$0xff] %v2383_v21  ;;  %1809 = vst [vmem:[%s3702_s30 + $0x18] sm:$0xff] %v2384_v22  ;;  %v2385_v26 = vpack.c.bf16 %v1434_v24, %v1432_v23  ;;  %v2386_v30 = vpack.c.bf16 %v1547_v25, %v1545_v43  ;;  %v1436_v31 = vpop.f32.mrb[38].mxu0  ;;  %v1549_v12 = vpop.f32.mrb[38].mxu1  ;;  %p2861_p12 = scmp.ne.s32.totalorder %s3742_s19, %s2860_s29  ;;  %s2982_s18 = smov [#allocation11]  }
 0x2ef   : > { %v1438_v6 = vpop.f32.mrb[39].mxu0  ;;  %v1551_v33 = vpop.f32.mrb[39].mxu1  ;;  %s2864_s24 = sshll.u32 %s2982_s18, 4  ;;  %s2865_s24 = int_to_ptr.vmem [resolvable:$false] %s2864_s24 }
 0x2f0   : > { %1810 = vst [vmem:[%s3702_s30 + $0x20] sm:$0xff] %v2385_v26  ;;  %1811 = vst [vmem:[%s3702_s30 + $0x28] sm:$0xff] %v2386_v30  ;;  %v2387_v5 = vpack.c.bf16 %v1438_v6, %v1436_v31  ;;  %v2388_v34 = vpack.c.bf16 %v1551_v33, %v1549_v12  ;;  %v1442_v37 = vpop.f32.mrb[40].mxu0  ;;  %v1555_v38 = vpop.f32.mrb[40].mxu1  ;;  %p2862_p2 = pnand %p2861_p12, %p3190_p5  ;;  %s2866_s21 = scalar_lea.vmem %s2865_s24, 8192 }
 0x2f1   : > { %v1444_v39 = vpop.f32.mrb[41].mxu0  ;;  %v1557_v40 = vpop.f32.mrb[41].mxu1  ;;  %p2867_p4 = scmp.lt.s32.totalorder %s3742_s19, %s2865_s24  ;;  %p2868_p9 = scmp.lt.s32.totalorder %s2866_s21, %s2860_s29 }
 0x2f2   : > { %1812 = vst [vmem:[%s3702_s30 + $0x30] sm:$0xff] %v2387_v5  ;;  %1813 = vst [vmem:[%s3702_s30 + $0x38] sm:$0xff] %v2388_v34  ;;  %v2389_v14 = vpack.c.bf16 %v1444_v39, %v1442_v37  ;;  %v2390_v15 = vpack.c.bf16 %v1557_v40, %v1555_v38  ;;  %v1446_v41 = vpop.f32.mrb[42].mxu0  ;;  %v1559_v52 = vpop.f32.mrb[42].mxu1  ;;  %p2863_p1 = pneg %p2862_p2 }
 0x2f3   : > { %v1448_v20 = vpop.f32.mrb[43].mxu0  ;;  %v1561_v11 = vpop.f32.mrb[43].mxu1  ;;  %p2869_p0 = por %p2868_p9, %p2867_p4 }
 0x2f4   : > { %1814 = vst [vmem:[%s3702_s30 + $0x40] sm:$0xff] %v2389_v14  ;;  %1815 = vst [vmem:[%s3702_s30 + $0x48] sm:$0xff] %v2390_v15  ;;  %v2391_v45 = vpack.c.bf16 %v1448_v20, %v1446_v41  ;;  %v2392_v46 = vpack.c.bf16 %v1561_v11, %v1559_v52  ;;  %v3749_v20 = vld [vmem:[%s3898_s25] ss:$0 sm:$0xff] }
 0x2f5   : > { %v1452_v35 = vpop.f32.mrb[44].mxu0  ;;  %v1565_v47 = vpop.f32.mrb[44].mxu1  ;;  %p2870_p11 = pnand %p2869_p0, %p2863_p1 }
 0x2f6   : > { %1816 = vst [vmem:[%s3702_s30 + $0x50] sm:$0xff] %v2391_v45  ;;  %1817 = vst [vmem:[%s3702_s30 + $0x58] sm:$0xff] %v2392_v46  ;;  %v1454_v48 = vpop.f32.mrb[45].mxu0  ;;  %v1567_v32 = vpop.f32.mrb[45].mxu1 }
 0x2f7   : > { %v2393_v13 = vpack.c.bf16 %v1454_v48, %v1452_v35  ;;  %v2394_v51 = vpack.c.bf16 %v1567_v32, %v1565_v47  ;;  %v1456_v27 = vpop.f32.mrb[46].mxu0  ;;  %v1569_v28 = vpop.f32.mrb[46].mxu1 }
 0x2f8   : > { %v1458_v49 = vpop.f32.mrb[47].mxu0  ;;  %v1571_v50 = vpop.f32.mrb[47].mxu1 }
 0x2f9   : > { %1818 = vst [vmem:[%s3702_s30 + $0x60] sm:$0xff] %v2393_v13  ;;  %1819 = vst [vmem:[%s3702_s30 + $0x68] sm:$0xff] %v2394_v51  ;;  %v2395_v54 = vpack.c.bf16 %v1458_v49, %v1456_v27  ;;  %v2396_v55 = vpack.c.bf16 %v1571_v50, %v1569_v28 }
 0x2fb   : > { %1820 = vst [vmem:[%s3702_s30 + $0x70] sm:$0xff] %v2395_v54  ;;  %1821 = vst [vmem:[%s3702_s30 + $0x78] sm:$0xff] %v2396_v55 }
 0x2fd   : > { %v1462_v57 = vpop.f32.mrb[48].mxu0  ;;  %v1575_v56 = vpop.f32.mrb[48].mxu1 }
 0x2fe   : > { %v1464_v29 = vpop.f32.mrb[49].mxu0  ;;  %v1577_v36 = vpop.f32.mrb[49].mxu1 }
 0x2ff   : > { %v2397_v58 = vpack.c.bf16 %v1464_v29, %v1462_v57  ;;  %v2398_v53 = vpack.c.bf16 %v1577_v36, %v1575_v56  ;;  %v1466_v61 = vpop.f32.mrb[50].mxu0  ;;  %v1579_v18 = vpop.f32.mrb[50].mxu1 }
 0x300   : > { %v1468_v1 = vpop.f32.mrb[51].mxu0  ;;  %v1581_v2 = vpop.f32.mrb[51].mxu1 }
 0x301   : > { %1822 = vst [vmem:[%s3702_s30 + $0x80] sm:$0xff] %v2397_v58  ;;  %1823 = vst [vmem:[%s3702_s30 + $0x88] sm:$0xff] %v2398_v53  ;;  %v2399_v3 = vpack.c.bf16 %v1468_v1, %v1466_v61  ;;  %v2400_v60 = vpack.c.bf16 %v1581_v2, %v1579_v18 }
 0x303   : > { %1824 = vst [vmem:[%s3702_s30 + $0x90] sm:$0xff] %v2399_v3  ;;  %1825 = vst [vmem:[%s3702_s30 + $0x98] sm:$0xff] %v2400_v60 }
 0x305   : > { %v1472_v4 = vpop.f32.mrb[52].mxu0  ;;  %v1585_v7 = vpop.f32.mrb[52].mxu1 }
 0x306   : > { %v1474_v8 = vpop.f32.mrb[53].mxu0  ;;  %v1587_v62 = vpop.f32.mrb[53].mxu1 }
 0x307   : > { %v2401_v42 = vpack.c.bf16 %v1474_v8, %v1472_v4  ;;  %v2402_v63 = vpack.c.bf16 %v1587_v62, %v1585_v7  ;;  %v1476_v0 = vpop.f32.mrb[54].mxu0  ;;  %v1589_v9 = vpop.f32.mrb[54].mxu1 }
 0x308   : > { %v1478_v16 = vpop.f32.mrb[55].mxu0  ;;  %v1591_v17 = vpop.f32.mrb[55].mxu1 }
 0x309   : > { %1826 = vst [vmem:[%s3702_s30 + $0xa0] sm:$0xff] %v2401_v42  ;;  %1827 = vst [vmem:[%s3702_s30 + $0xa8] sm:$0xff] %v2402_v63  ;;  %v2403_v59 = vpack.c.bf16 %v1478_v16, %v1476_v0  ;;  %v2404_v44 = vpack.c.bf16 %v1591_v17, %v1589_v9 }
 0x30b   : > { %1828 = vst [vmem:[%s3702_s30 + $0xb0] sm:$0xff] %v2403_v59  ;;  %1829 = vst [vmem:[%s3702_s30 + $0xb8] sm:$0xff] %v2404_v44 }
 0x30d   : > { %v1482_v19 = vpop.f32.mrb[56].mxu0  ;;  %v1595_v10 = vpop.f32.mrb[56].mxu1 }
 0x30e   : > { %v1484_v21 = vpop.f32.mrb[57].mxu0  ;;  %v1597_v22 = vpop.f32.mrb[57].mxu1 }
 0x30f   : > { %v2405_v23 = vpack.c.bf16 %v1484_v21, %v1482_v19  ;;  %v2406_v43 = vpack.c.bf16 %v1597_v22, %v1595_v10  ;;  %v1486_v24 = vpop.f32.mrb[58].mxu0  ;;  %v1599_v25 = vpop.f32.mrb[58].mxu1 }
 0x310   : > { %v1488_v26 = vpop.f32.mrb[59].mxu0  ;;  %v1601_v30 = vpop.f32.mrb[59].mxu1 }
 0x311   : > { %1830 = vst [vmem:[%s3702_s30 + $0xc0] sm:$0xff] %v2405_v23  ;;  %1831 = vst [vmem:[%s3702_s30 + $0xc8] sm:$0xff] %v2406_v43  ;;  %v2407_v31 = vpack.c.bf16 %v1488_v26, %v1486_v24  ;;  %v2408_v12 = vpack.c.bf16 %v1601_v30, %v1599_v25 }
 0x313   : > { %1832 = vst [vmem:[%s3702_s30 + $0xd0] sm:$0xff] %v2407_v31  ;;  %1833 = vst [vmem:[%s3702_s30 + $0xd8] sm:$0xff] %v2408_v12 }
 0x315   : > { %v1492_v6 = vpop.f32.mrb[60].mxu0  ;;  %v1605_v33 = vpop.f32.mrb[60].mxu1 }
 0x316   : > { %v1494_v5 = vpop.f32.mrb[61].mxu0  ;;  %v1607_v34 = vpop.f32.mrb[61].mxu1 }
 0x317   : > { %v2409_v37 = vpack.c.bf16 %v1494_v5, %v1492_v6  ;;  %v2410_v38 = vpack.c.bf16 %v1607_v34, %v1605_v33  ;;  %v1496_v39 = vpop.f32.mrb[62].mxu0  ;;  %v1609_v40 = vpop.f32.mrb[62].mxu1 }
 0x318   : > { %v1498_v14 = vpop.f32.mrb[63].mxu0  ;;  %v1611_v15 = vpop.f32.mrb[63].mxu1 }
 0x319   : > { %1834 = vst [vmem:[%s3702_s30 + $0xe0] sm:$0xff] %v2409_v37  ;;  %1835 = vst [vmem:[%s3702_s30 + $0xe8] sm:$0xff] %v2410_v38  ;;  %v2411_v41 = vpack.c.bf16 %v1498_v14, %v1496_v39  ;;  %v2412_v52 = vpack.c.bf16 %v1611_v15, %v1609_v40 }
 0x31b   : > { %1836 = vst [vmem:[%s3702_s30 + $0xf0] sm:$0xff] %v2411_v41  ;;  %1837 = vst [vmem:[%s3702_s30 + $0xf8] sm:$0xff] %v2412_v52 }
 0x31c   : > { %2873 = shalt.err (!%p2870_p11)
}
 0x31d   : > { %s2874_s30 = scalar_lea.hbm %s3738_s23, 4096  ;;  %s2878_s10 = scalar_lea.hbm %s3871_s9, 8192 }
 0x31e   : > { %p2875_p8 = scmp.ne.s32.totalorder %s3738_s23, %s2874_s30  ;;  %p2879_p10 = scmp.lt.u32.totalorder %s3738_s23, %s3871_s9 }
 0x31f   : > { %p2880_p3 = scmp.lt.u32.totalorder %s2878_s10, %s2874_s30  ;;  %p2882_p12 = scmp.lt.u32.totalorder %s2874_s30, %s3738_s23 }
 0x320   : > { %p2876_p13 = pnand %p2875_p8, %p3190_p5 }
 0x321   : > { %p2881_p7 = por %p2880_p3, %p2879_p10 }
 0x322   : > { %p2877_p6 = pneg %p2876_p13 }
 0x323   : > { %p2883_p2 = por %p2882_p12, %p2881_p7 }
 0x325   : > { %p2884_p1 = pnand %p2883_p2, %p2877_p6 }
 0x327   : > { %2887 = shalt.err (!%p2884_p1)
}
 0x328   : > { %s2983_s29 = smov 256   ;;  %s2984_s18 = smov 16   ;;  %v2452_v11 = vpop.f32.mrb[64].mxu0  ;;  %v2460_v45 = vpop.f32.mrb[64].mxu1 }
 0x329   : > { %2497 = dma.vmem_to_hbm [thread:$0]  (%p3190_p5), %s3742_s19, 4096, %s3738_s23, %s3751_s26, %s2983_s29, %s2983_s29, %s2984_s18   ;;  %v1952_v46 = vadd.f32 %v2452_v11, %v3749_v20  ;;  %v1984_v35 = vadd.f32 %v2460_v45, %v3749_v20  ;;  %v1943_v47 = vpop.f32.mrb[65].mxu0  ;;  %v1975_v48 = vpop.f32.mrb[65].mxu1 }
 0x32a   : > { %v1944_v32 = vadd.f32 %v3749_v20, %v1943_v47  ;;  %v1976_v13 = vadd.f32 %v3749_v20, %v1975_v48  ;;  %v2453_v51 = vpop.f32.mrb[66].mxu0  ;;  %v2461_v27 = vpop.f32.mrb[66].mxu1  ;;  %s3781_s24 = scalar_lea.vmem [#allocation13], %s2253_s28  ;;  %s2417_s22 = sshll.u32 %s3064_s17, 11 }
 0x32b   : > { %2008 = vst [vmem:[%s3781_s24 + $0x10] sm:$0xff] %v1952_v46  ;;  %2016 = vst [vmem:[%s3781_s24 + $0x50] sm:$0xff] %v1984_v35  ;;  %v1955_v28 = vadd.f32 %v2453_v51, %v3749_v20  ;;  %v1987_v49 = vadd.f32 %v2461_v27, %v3749_v20  ;;  %v1946_v50 = vpop.f32.mrb[67].mxu0  ;;  %v1978_v54 = vpop.f32.mrb[67].mxu1  ;;  %s2080_s28 = sshll.u32 %s3781_s24, 4  ;;  %s3899_s23 = sld [smem:[#allocation22_spill]]  ;;  %s3810_s28 = int_to_ptr.vmem [resolvable:$true] %s2080_s28 }
 0x32c   : > { %2006 = vst [vmem:[%s3781_s24] sm:$0xff] %v1944_v32  ;;  %2014 = vst [vmem:[%s3781_s24 + $0x40] sm:$0xff] %v1976_v13  ;;  %v1947_v55 = vadd.f32 %v3749_v20, %v1946_v50  ;;  %v1979_v57 = vadd.f32 %v3749_v20, %v1978_v54  ;;  %v2456_v56 = vpop.f32.mrb[68].mxu0  ;;  %v2464_v29 = vpop.f32.mrb[68].mxu1  ;;  %s2888_s30 = scalar_lea.vmem %s3810_s28, 2048  ;;  %s2985_s11 = smov [#allocation13]  }
 0x32d   : > { %2009 = vst [vmem:[%s3781_s24 + $0x18] sm:$0xff] %v1955_v28  ;;  %2017 = vst [vmem:[%s3781_s24 + $0x58] sm:$0xff] %v1987_v49  ;;  %v1968_v36 = vadd.f32 %v2456_v56, %v3749_v20  ;;  %v2000_v58 = vadd.f32 %v2464_v29, %v3749_v20  ;;  %v1959_v53 = vpop.f32.mrb[69].mxu0  ;;  %v1991_v61 = vpop.f32.mrb[69].mxu1  ;;  %p2889_p4 = scmp.ne.s32.totalorder %s3810_s28, %s2888_s30  ;;  %s2892_s27 = sshll.u32 %s2985_s11, 4  ;;  %s2893_s27 = int_to_ptr.vmem [resolvable:$false] %s2892_s27 }
 0x32e   : > { %2007 = vst [vmem:[%s3781_s24 + $0x8] sm:$0xff] %v1947_v55  ;;  %2015 = vst [vmem:[%s3781_s24 + $0x48] sm:$0xff] %v1979_v57  ;;  %v1960_v18 = vadd.f32 %v3749_v20, %v1959_v53  ;;  %v1992_v1 = vadd.f32 %v3749_v20, %v1991_v61  ;;  %v2457_v2 = vpop.f32.mrb[70].mxu0  ;;  %v2465_v3 = vpop.f32.mrb[70].mxu1  ;;  %s2894_s10 = scalar_lea.vmem %s2893_s27, 4096  ;;  %p2895_p11 = scmp.lt.s32.totalorder %s3810_s28, %s2893_s27 }
 0x32f   : > { %2012 = vst [vmem:[%s3781_s24 + $0x30] sm:$0xff] %v1968_v36  ;;  %2020 = vst [vmem:[%s3781_s24 + $0x70] sm:$0xff] %v2000_v58  ;;  %v1971_v60 = vadd.f32 %v2457_v2, %v3749_v20  ;;  %v2003_v4 = vadd.f32 %v2465_v3, %v3749_v20  ;;  %v1962_v7 = vpop.f32.mrb[71].mxu0  ;;  %v1994_v8 = vpop.f32.mrb[71].mxu1  ;;  %p2890_p9 = pnand %p2889_p4, %p3190_p5  ;;  %p2896_p8 = scmp.lt.s32.totalorder %s2894_s10, %s2888_s30 }
 0x330   : > { %2010 = vst [vmem:[%s3781_s24 + $0x20] sm:$0xff] %v1960_v18  ;;  %2018 = vst [vmem:[%s3781_s24 + $0x60] sm:$0xff] %v1992_v1  ;;  %v1963_v62 = vadd.f32 %v3749_v20, %v1962_v7  ;;  %v1995_v42 = vadd.f32 %v3749_v20, %v1994_v8 }
 0x331   : > { %s3808_s21 = scalar_lea.hbm %s3899_s23, %s2417_s22  ;;  %2013 = vst [vmem:[%s3781_s24 + $0x38] sm:$0xff] %v1971_v60  ;;  %2021 = vst [vmem:[%s3781_s24 + $0x78] sm:$0xff] %v2003_v4  ;;  %p2891_p0 = pneg %p2890_p9 }
 0x332   : > { %2011 = vst [vmem:[%s3781_s24 + $0x28] sm:$0xff] %v1963_v62  ;;  %2019 = vst [vmem:[%s3781_s24 + $0x68] sm:$0xff] %v1995_v42  ;;  %p2897_p13 = por %p2896_p8, %p2895_p11 }
 0x334   : > { %p2898_p6 = pnand %p2897_p13, %p2891_p0 }
 0x336   : > { %2901 = shalt.err (!%p2898_p6)
}
 0x337   : > { %s2902_s13 = scalar_lea.hbm %s3808_s21, 2048  ;;  %s2906_s18 = scalar_lea.hbm %s3899_s23, 4096 }
 0x338   : > { %p2903_p10 = scmp.ne.s32.totalorder %s3808_s21, %s2902_s13  ;;  %p2907_p12 = scmp.lt.u32.totalorder %s3808_s21, %s3899_s23 }
 0x339   : > { %p2908_p2 = scmp.lt.u32.totalorder %s2906_s18, %s2902_s13  ;;  %p2910_p4 = scmp.lt.u32.totalorder %s2902_s13, %s3808_s21 }
 0x33a   : > { %p2904_p3 = pnand %p2903_p10, %p3190_p5 }
 0x33b   : > { %p2909_p1 = por %p2908_p2, %p2907_p12 }
 0x33c   : > { %p2905_p7 = pneg %p2904_p3 }
 0x33d   : > { %p2911_p9 = por %p2910_p4, %p2909_p1 }
 0x33f   : > { %p2912_p0 = pnand %p2911_p9, %p2905_p7 }
 0x341   : > { %2915 = shalt.err (!%p2912_p0)
}
 0x342   : > { %s2986_s17 = smov 128   ;;  %s2987_s19 = smov 8  }
 0x343   : > { %2498 = dma.vmem_to_hbm [thread:$0]  (%p3190_p5), %s3810_s28, 2048, %s3808_s21, %s3751_s26, %s2986_s17, %s2986_s17, %s2987_s19  }
 0x344 PF: > { %s3900_s30 = sld [smem:[#allocation19_spill]]  ;;  %s3901_s11 = sld [smem:[#allocation20_spill]] }
 0x345   : > { %p3903_p8 = scmp.ge.s32.totalorder %s2966_s16, 2 }
 0x34a   : > { %s2095_s27 = sand.u32 1, %s3900_s30   ;;  %p3902_p11 = scmp.ne.s32.totalorder %s3901_s11, 0 }
 0x34b   : > { %s2096_s10 = scalar_lea.sflag [#allocation4], %s2095_s27 }
 0x34c   : > { %p2517_p13 = pnand %p3903_p8, %p3902_p11 }
 0x34e   : > { %2945 = dma.done.wait (!%p2517_p13), %s2096_s10, 8192  }
 0x34f   : > { %2947 = vsyncadd (!%p2517_p13), %s2096_s10, 4294959104  ;;  %s3904_s13 = sadd.s32 4294967294, %s2966_s16  }
 0x350   : > { %s2104_s25 = sand.u32 1, %s3904_s13  }
 0x351   : > { %s2105_s29 = scalar_lea.sflag [#allocation12], %s2104_s25 }
 0x352   : > { %2949 = dma.done.wait (!%p2517_p13), %s2105_s29, 6144  }
 0x353   : > { %2951 = vsyncadd (!%p2517_p13), %s2105_s29, 4294961152  ;;  %p29_p5 = scmp.ge.s32.totalorder %s3176_s7, 4   ;;  %s3905_s13 = smov %s2958_s14 }
 0x354   : > { %s3906_s14 = smov %s2962_s15  ;;  %s3907_s15 = smov %s3186_s20 }
 0x355   : > { %s3908_s16 = smov %s3176_s7  ;;  %31 = sbr.rel (!%p29_p5) target bundleno = 12 (0xc), region = 141 }
 0x35c   :  { %2119 = vsyncpa [#allocation3], 1 }
 0x35d   :  { %2121 = vsyncpa [#allocation3 + $0x1], 1 }
 0x35e   :  { %2122 = vsyncpa [#allocation6], 1 }
 0x35f   :  { %2123 = vsyncpa [#allocation9], 1 }
 0x360   :  { %2124 = vsyncpa [#allocation4], 1 }
 0x361   :  { %2126 = vsyncpa [#allocation4 + $0x1], 1 }
 0x362   :  { %2127 = vsyncpa [#allocation12], 1 }
 0x363   :  { %2129 = vsyncpa [#allocation12 + $0x1], 1 }

</bundles_post_ra>
